<compile_context>
chip_gen: v7x
topology: tpu7x:2x2x1
jax: 0.10.0
libtpu: 0.0.40
codegen_flags: <defaults>
</compile_context>

<pallas_src>
import math
from functools import partial

import jax
import jax.numpy as jnp
from jax.experimental import pallas as pl
from jax.experimental.pallas import tpu as pltpu

# ------------------------- small, deterministic config -------------------------
CTX_NUMS = (11, 23, 7, 19, 13, 29, 5, 17)   # 8 context features -> S = 8
B = 8                                       # batch
S = len(CTX_NUMS)                           # "sequence" length = number of context features
E = 32                                      # ctx_embed_size
NH = 2                                      # ctx_num_heads
DH = E // NH                                # head dim
H = 64                                      # ctx_hidden_size (FFN)
C = 16                                      # cross_size
LN_EPS = 1e-5                               # PyTorch TransformerEncoderLayer default
N = B * S                                   # total context tokens

TOTAL = sum(CTX_NUMS)                       # 124 embedding rows in the fused table
TOTAL_PAD = 128                             # pad to one full lane tile (do NOT widen for v6e/v7x)
assert TOTAL <= TOTAL_PAD

_offsets = []
_acc = 0
for _n in CTX_NUMS:
    _offsets.append(_acc)
    _acc += _n
OFFSETS = tuple(_offsets)                   # start row of each feature's table

NEG_INF = -1e30

# ---- constant-slab row layout (all row starts are multiples of 8) ----
ROW_TBL = 0                                 # table_big [TOTAL_PAD, 128] = [emb | qkv(+bias,scale folded)]
ROW_WO = ROW_TBL + TOTAL_PAD                # wo   [E, E]
ROW_W1 = ROW_WO + E                         # w1   [E, H]
ROW_W2 = ROW_W1 + E                         # w2   [H, E]
ROW_WD = ROW_W2 + H                         # wd   [2E, C]
ROW_MASK = ROW_WD + 2 * E                   # additive block-diag mask [N, N]
ROW_VEC = ROW_MASK + N                      # 8 rows of small vectors
ROWS = ROW_VEC + 8                          # 392 rows total (multiple of 8)


def _layernorm(x, gamma, beta):
    mu = jnp.mean(x, axis=-1, keepdims=True)
    var = jnp.mean((x - mu) ** 2, axis=-1, keepdims=True)
    return (x - mu) * jax.lax.rsqrt(var + LN_EPS) * gamma + beta


# ------------------------------- Pallas kernel ---------------------------------
def ctx_kernel(idx_ref, slab_ref, out_ref):
    # ---- fused embedding gather + QKV projection: ONE one-hot matmul on the MXU.
    # table_big columns: [0:32]=embedding, [32:64]=Q (scale folded), [64:96]=K,
    # [96:128]=V; the in_proj bias is baked into the table rows (one-hot rows sum to 1).
    idx = idx_ref[...]                                                 # [N, 1] int32
    col = jax.lax.broadcasted_iota(jnp.int32, (N, TOTAL_PAD), 1)
    onehot = (col == idx).astype(jnp.float32)                          # [N, 128]
    xqkv = jnp.dot(onehot, slab_ref[ROW_TBL:ROW_TBL + TOTAL_PAD, :],
                   preferred_element_type=jnp.float32)                 # [N, 128]

    x = xqkv[:, 0:E]                                                   # [N, E]
    # per-head views (static lane slices -> XLU slot, otherwise idle)
    q = jnp.stack([xqkv[:, E:E + DH], xqkv[:, E + DH:2 * E]])          # [NH, N, DH] (pre-scaled)
    k = jnp.stack([xqkv[:, 2 * E:2 * E + DH], xqkv[:, 2 * E + DH:3 * E]])
    v = jnp.stack([xqkv[:, 3 * E:3 * E + DH], xqkv[:, 3 * E + DH:4 * E]])

    # ---- multi-head self-attention, batched over heads -------------------------
    s = jnp.einsum('hqd,hkd->hqk', q, k,
                   preferred_element_type=jnp.float32)                 # [NH, N, N]
    # precomputed block-diagonal additive mask (tokens only attend within their batch row)
    s = s + slab_ref[ROW_MASK:ROW_MASK + N, 0:N][None, :, :]
    s = s - jnp.max(s, axis=-1, keepdims=True)
    p = jnp.exp(s)
    p = p * pl.reciprocal(jnp.sum(p, axis=-1, keepdims=True), approx=True)
    ctx = jnp.einsum('hqk,hkd->hqd', p, v,
                     preferred_element_type=jnp.float32)               # [NH, N, DH]

    # head re-combination: one lane concat + one dot against wo
    attn_in = jnp.concatenate([ctx[0], ctx[1]], axis=-1)               # [N, E]
    bo = slab_ref[ROW_VEC + 0:ROW_VEC + 1, 0:E]
    attn = jnp.dot(attn_in, slab_ref[ROW_WO:ROW_WO + E, 0:E],
                   preferred_element_type=jnp.float32) + bo            # [N, E]

    g1 = slab_ref[ROW_VEC + 1:ROW_VEC + 2, 0:E]
    be1 = slab_ref[ROW_VEC + 2:ROW_VEC + 3, 0:E]
    h1 = _layernorm(x + attn, g1, be1)

    # ---- feed-forward (ReLU) ----------------------------------------------------
    b1 = slab_ref[ROW_VEC + 3:ROW_VEC + 4, 0:H]
    ff = jnp.maximum(
        jnp.dot(h1, slab_ref[ROW_W1:ROW_W1 + E, 0:H],
                preferred_element_type=jnp.float32) + b1, 0.0)
    b2 = slab_ref[ROW_VEC + 4:ROW_VEC + 5, 0:E]
    ff = jnp.dot(ff, slab_ref[ROW_W2:ROW_W2 + H, 0:E],
                 preferred_element_type=jnp.float32) + b2
    g2 = slab_ref[ROW_VEC + 5:ROW_VEC + 6, 0:E]
    be2 = slab_ref[ROW_VEC + 6:ROW_VEC + 7, 0:E]
    h2 = _layernorm(h1 + ff, g2, be2)                                  # [N, E]

    # ---- MeanMaxPooling over the context ("seq") axis — batched -----------------
    h3 = h2.reshape(B, S, E)                                           # sublane-aligned split
    mean_p = jnp.sum(h3, axis=1) * (1.0 / S)                           # [B, E]
    max_p = jnp.max(h3, axis=1)                                        # [B, E]
    pooled = jnp.concatenate([mean_p, max_p], axis=-1)                 # [B, 2E]

    # ---- final dense: 2E -> cross_size ------------------------------------------
    bd = slab_ref[ROW_VEC + 7:ROW_VEC + 8, 0:C]
    out_ref[...] = jnp.dot(pooled, slab_ref[ROW_WD:ROW_WD + 2 * E, 0:C],
                           preferred_element_type=jnp.float32) + bd


# --------------------------------- wrapper --------------------------------------
def prepare_kernel_params(params):
    """One-time repack of conventional-layout weights into a single constant slab."""
    dot_h = partial(jnp.dot, precision=jax.lax.Precision.HIGHEST)

    table = jnp.concatenate(params["emb_tables"], axis=0)              # [TOTAL, E]
    table = jnp.pad(table, ((0, TOTAL_PAD - TOTAL), (0, 0)))           # [128, E]

    # fold 1/sqrt(DH) into the Q projection (columns 0:E of wqkv / bqkv)
    scale = 1.0 / math.sqrt(DH)
    col_scale = jnp.concatenate(
        [jnp.full((E,), scale, jnp.float32), jnp.ones((2 * E,), jnp.float32)])
    wqkv_s = params["wqkv"] * col_scale[None, :]                       # [E, 3E]
    bqkv_s = params["bqkv"] * col_scale[None, :]                       # [1, 3E]

    # bake the QKV projection AND its bias into the embedding table (one-hot rows sum to 1)
    tbl_qkv = dot_h(table, wqkv_s) + bqkv_s                            # [128, 3E]
    table_big = jnp.concatenate([table, tbl_qkv], axis=1)              # [128, 128]

    # block-diagonal additive attention mask (constant)
    rb = jnp.arange(N)[:, None] // S
    cb = jnp.arange(N)[None, :] // S
    maskbias = jnp.where(rb == cb, 0.0, NEG_INF).astype(jnp.float32)   # [N, N]

    slab = jnp.zeros((ROWS, 128), jnp.float32)
    slab = slab.at[ROW_TBL:ROW_TBL + TOTAL_PAD, :].set(table_big)
    slab = slab.at[ROW_WO:ROW_WO + E, 0:E].set(params["wo"])
    slab = slab.at[ROW_W1:ROW_W1 + E, 0:H].set(params["w1"])
    slab = slab.at[ROW_W2:ROW_W2 + H, 0:E].set(params["w2"])
    slab = slab.at[ROW_WD:ROW_WD + 2 * E, 0:C].set(params["wd"])
    slab = slab.at[ROW_MASK:ROW_MASK + N, 0:N].set(maskbias)
    slab = slab.at[ROW_VEC + 0, 0:E].set(params["bo"][0])
    slab = slab.at[ROW_VEC + 1, 0:E].set(params["g1"][0])
    slab = slab.at[ROW_VEC + 2, 0:E].set(params["be1"][0])
    slab = slab.at[ROW_VEC + 3, 0:H].set(params["b1"][0])
    slab = slab.at[ROW_VEC + 4, 0:E].set(params["b2"][0])
    slab = slab.at[ROW_VEC + 5, 0:E].set(params["g2"][0])
    slab = slab.at[ROW_VEC + 6, 0:E].set(params["be2"][0])
    slab = slab.at[ROW_VEC + 7, 0:C].set(params["bd"][0])
    return slab


@jax.jit
def context_transformer_forward(ctx_in, slab):
    # only glue left outside the kernel: build the flat int32 row indices
    offs = jnp.asarray(OFFSETS, dtype=jnp.int32)
    idx = jnp.stack(ctx_in, axis=1).astype(jnp.int32) + offs[None, :]   # [B, S]
    idx = idx.reshape(N, 1)

    vmem = pl.BlockSpec(memory_space=pltpu.MemorySpace.VMEM)
    out = pl.pallas_call(
        ctx_kernel,
        out_shape=jax.ShapeDtypeStruct((B, C), jnp.float32),
        in_specs=[vmem, vmem],
        out_specs=vmem,
    )(idx, slab)
    return out                                                          # [B, cross_size]


# ------------------------------ reference (JAX) ----------------------------------
def reference_forward(ctx_in, params):
    dot = partial(jnp.dot, precision=jax.lax.Precision.HIGHEST)
    embeds = [tbl[idx] for tbl, idx in zip(params["emb_tables"], ctx_in)]
    x = jnp.stack(embeds, axis=1).astype(jnp.float32)                   # [B, S, E]
    x2d = x.reshape(N, E)
    qkv = dot(x2d, params["wqkv"]) + params["bqkv"]
    q = qkv[:, :E].reshape(B, S, NH, DH)
    k = qkv[:, E:2 * E].reshape(B, S, NH, DH)
    v = qkv[:, 2 * E:].reshape(B, S, NH, DH)
    s = jnp.einsum("bqhd,bkhd->bhqk", q, k,
                   precision=jax.lax.Precision.HIGHEST) / math.sqrt(DH)
    p = jax.nn.softmax(s, axis=-1)
    ctx = jnp.einsum("bhqk,bkhd->bqhd", p, v,
                     precision=jax.lax.Precision.HIGHEST).reshape(N, E)
    attn = dot(ctx, params["wo"]) + params["bo"]
    h1 = _layernorm(x2d + attn, params["g1"], params["be1"])
    ff = jnp.maximum(dot(h1, params["w1"]) + params["b1"], 0.0)
    ff = dot(ff, params["w2"]) + params["b2"]
    h2 = _layernorm(h1 + ff, params["g2"], params["be2"]).reshape(B, S, E)
    pooled = jnp.concatenate([h2.mean(axis=1), h2.max(axis=1)], axis=-1)
    return dot(pooled, params["wd"]) + params["bd"]


# --------------------------------- params ----------------------------------------
def init_params(key):
    ks = jax.random.split(key, 24)
    sc = 0.1
    emb_tables = [sc * jax.random.normal(ks[i], (n, E), jnp.float32)
                  for i, n in enumerate(CTX_NUMS)]
    p = dict(
        emb_tables=emb_tables,
        # attention: in_proj (E -> 3E) and out_proj (E -> E), "x @ W" layout
        wqkv=sc * jax.random.normal(ks[8], (E, 3 * E), jnp.float32),
        bqkv=sc * jax.random.normal(ks[9], (1, 3 * E), jnp.float32),
        wo=sc * jax.random.normal(ks[10], (E, E), jnp.float32),
        bo=sc * jax.random.normal(ks[11], (1, E), jnp.float32),
        # layernorm 1 / 2
        g1=jnp.ones((1, E), jnp.float32),
        be1=jnp.zeros((1, E), jnp.float32),
        g2=jnp.ones((1, E), jnp.float32),
        be2=jnp.zeros((1, E), jnp.float32),
        # feed forward E -> H -> E
        w1=sc * jax.random.normal(ks[12], (E, H), jnp.float32),
        b1=sc * jax.random.normal(ks[13], (1, H), jnp.float32),
        w2=sc * jax.random.normal(ks[14], (H, E), jnp.float32),
        b2=sc * jax.random.normal(ks[15], (1, E), jnp.float32),
        # final dense 2E -> cross_size
        wd=sc * jax.random.normal(ks[16], (2 * E, C), jnp.float32),
        bd=sc * jax.random.normal(ks[17], (1, C), jnp.float32),
    )
    return p


# ----------------------------------- main -----------------------------------------
if __name__ == "__main__":
    key = jax.random.PRNGKey(0)
    pkey, ikey = jax.random.split(key)
    params = init_params(pkey)
    slab = prepare_kernel_params(params)         # one-time repack, outside the forward

    idx_keys = jax.random.split(ikey, S)
    # ctx_in: list of S int32 tensors, each of shape [B] (one context feature each)
    ctx_in = [jax.random.randint(idx_keys[i], (B,), 0, CTX_NUMS[i], dtype=jnp.int32)
              for i in range(S)]

    out = context_transformer_forward(ctx_in, slab)
    out = jax.block_until_ready(out)

    assert out.shape == (B, C), out.shape
    assert bool(jnp.all(jnp.isfinite(out)))

    ref = reference_forward(ctx_in, params)
    err = float(jnp.max(jnp.abs(out - ref)))
    assert bool(jnp.allclose(out, ref, rtol=1e-2, atol=1e-2)), err

    print("KERNEL_OK")
</pallas_src>

<mosaic_0001>
module attributes {stable_mosaic.version = 11 : i64} {
  func.func @ctx_kernel(%arg0: memref<64x1xi32, #tpu.memory_space<vmem>>, %arg1: memref<392x128xf32, #tpu.memory_space<vmem>>, %arg2: memref<8x16xf32, #tpu.memory_space<vmem>>) attributes {dimension_semantics = [], scalar_prefetch = 0 : i64, scratch_operands = 0 : i64, tpu.core_type = #tpu.core_type<tc>} {
    %c0 = arith.constant 0 : index
    %c0_0 = arith.constant 0 : index
    %0 = vector.load %arg0[%c0, %c0_0] : memref<64x1xi32, #tpu.memory_space<vmem>>, vector<64x1xi32>
    %1 = tpu.iota {dimensions = array<i32: 1>} : vector<64x128xi32>
    %2 = vector.broadcast %0 : vector<64x1xi32> to vector<64x128xi32>
    %3 = arith.cmpi eq, %1, %2 : vector<64x128xi32>
    %4 = arith.extui %3 : vector<64x128xi1> to vector<64x128xi32>
    %5 = arith.sitofp %4 : vector<64x128xi32> to vector<64x128xf32>
    %c0_1 = arith.constant 0 : index
    %c0_2 = arith.constant 0 : index
    %6 = vector.load %arg1[%c0_1, %c0_2] : memref<392x128xf32, #tpu.memory_space<vmem>>, vector<128x128xf32>
    %cst = arith.constant dense<0.000000e+00> : vector<64x128xf32>
    %7 = tpu.matmul %5, %6, %cst {dimension_numbers = #tpu.dot_dimension_numbers<[1], [0], [0], [1], [0, 0, 1, 1], [], []>} : vector<64x128xf32>, vector<128x128xf32>, vector<64x128xf32> -> vector<64x128xf32>
    %8 = vector.extract_strided_slice %7 {offsets = [0, 0], sizes = [64, 32], strides = [1, 1]} : vector<64x128xf32> to vector<64x32xf32>
    %9 = vector.extract_strided_slice %7 {offsets = [0, 32], sizes = [64, 16], strides = [1, 1]} : vector<64x128xf32> to vector<64x16xf32>
    %10 = vector.extract_strided_slice %7 {offsets = [0, 48], sizes = [64, 16], strides = [1, 1]} : vector<64x128xf32> to vector<64x16xf32>
    %11 = vector.shape_cast %9 : vector<64x16xf32> to vector<1x64x16xf32>
    %12 = vector.shape_cast %10 : vector<64x16xf32> to vector<1x64x16xf32>
    %13 = tpu.concatenate %11, %12 in 0 : vector<1x64x16xf32>, vector<1x64x16xf32> -> vector<2x64x16xf32>
    %14 = vector.extract_strided_slice %7 {offsets = [0, 64], sizes = [64, 16], strides = [1, 1]} : vector<64x128xf32> to vector<64x16xf32>
    %15 = vector.extract_strided_slice %7 {offsets = [0, 80], sizes = [64, 16], strides = [1, 1]} : vector<64x128xf32> to vector<64x16xf32>
    %16 = vector.shape_cast %14 : vector<64x16xf32> to vector<1x64x16xf32>
    %17 = vector.shape_cast %15 : vector<64x16xf32> to vector<1x64x16xf32>
    %18 = tpu.concatenate %16, %17 in 0 : vector<1x64x16xf32>, vector<1x64x16xf32> -> vector<2x64x16xf32>
    %19 = vector.extract_strided_slice %7 {offsets = [0, 96], sizes = [64, 16], strides = [1, 1]} : vector<64x128xf32> to vector<64x16xf32>
    %20 = vector.extract_strided_slice %7 {offsets = [0, 112], sizes = [64, 16], strides = [1, 1]} : vector<64x128xf32> to vector<64x16xf32>
    %21 = vector.shape_cast %19 : vector<64x16xf32> to vector<1x64x16xf32>
    %22 = vector.shape_cast %20 : vector<64x16xf32> to vector<1x64x16xf32>
    %23 = tpu.concatenate %21, %22 in 0 : vector<1x64x16xf32>, vector<1x64x16xf32> -> vector<2x64x16xf32>
    "tpu.trace_start"() <{level = 10 : i32, message = "hqd,hkd->hqk"}> : () -> ()
    %cst_3 = arith.constant dense<0.000000e+00> : vector<2x64x64xf32>
    %24 = tpu.matmul %13, %18, %cst_3 {dimension_numbers = #tpu.dot_dimension_numbers<[2], [2], [1], [1], [0, 0, 0, 1, 1, 1], [0], [0]>} : vector<2x64x16xf32>, vector<2x64x16xf32>, vector<2x64x64xf32> -> vector<2x64x64xf32>
    "tpu.trace_stop"() : () -> ()
    %c320 = arith.constant 320 : index
    %c0_4 = arith.constant 0 : index
    %25 = vector.load %arg1[%c320, %c0_4] : memref<392x128xf32, #tpu.memory_space<vmem>>, vector<64x64xf32>
    %26 = vector.shape_cast %25 : vector<64x64xf32> to vector<1x64x64xf32>
    %27 = vector.broadcast %26 : vector<1x64x64xf32> to vector<2x64x64xf32>
    %28 = arith.addf %24, %27 : vector<2x64x64xf32>
    %cst_5 = arith.constant dense<0xFF800000> : vector<2x64xf32>
    %29 = vector.multi_reduction <maximumf>, %28, %cst_5 [2] : vector<2x64x64xf32> to vector<2x64xf32>
    %30 = vector.shape_cast %29 : vector<2x64xf32> to vector<2x64x1xf32>
    %31 = vector.broadcast %30 : vector<2x64x1xf32> to vector<2x64x64xf32>
    %32 = arith.subf %28, %31 : vector<2x64x64xf32>
    %33 = math.exp %32 : vector<2x64x64xf32>
    %cst_6 = arith.constant dense<0.000000e+00> : vector<2x64xf32>
    %34 = vector.multi_reduction <add>, %33, %cst_6 [2] : vector<2x64x64xf32> to vector<2x64xf32>
    %35 = vector.shape_cast %34 : vector<2x64xf32> to vector<2x64x1xf32>
    %36 = tpu.reciprocal %35 {approx = true} : vector<2x64x1xf32> -> vector<2x64x1xf32>
    %37 = vector.broadcast %36 : vector<2x64x1xf32> to vector<2x64x64xf32>
    %38 = arith.mulf %33, %37 : vector<2x64x64xf32>
    "tpu.trace_start"() <{level = 10 : i32, message = "hqk,hkd->hqd"}> : () -> ()
    %cst_7 = arith.constant dense<0.000000e+00> : vector<2x64x16xf32>
    %39 = tpu.matmul %38, %23, %cst_7 {dimension_numbers = #tpu.dot_dimension_numbers<[2], [1], [1], [2], [0, 0, 0, 1, 1, 2], [0], [0]>} : vector<2x64x64xf32>, vector<2x64x16xf32>, vector<2x64x16xf32> -> vector<2x64x16xf32>
    "tpu.trace_stop"() : () -> ()
    %40 = vector.extract_strided_slice %39 {offsets = [0, 0, 0], sizes = [1, 64, 16], strides = [1, 1, 1]} : vector<2x64x16xf32> to vector<1x64x16xf32>
    %41 = vector.shape_cast %40 : vector<1x64x16xf32> to vector<64x16xf32>
    %42 = vector.extract_strided_slice %39 {offsets = [1, 0, 0], sizes = [1, 64, 16], strides = [1, 1, 1]} : vector<2x64x16xf32> to vector<1x64x16xf32>
    %43 = vector.shape_cast %42 : vector<1x64x16xf32> to vector<64x16xf32>
    %44 = tpu.concatenate %41, %43 in 1 : vector<64x16xf32>, vector<64x16xf32> -> vector<64x32xf32>
    %c384 = arith.constant 384 : index
    %c0_8 = arith.constant 0 : index
    %45 = vector.load %arg1[%c384, %c0_8] : memref<392x128xf32, #tpu.memory_space<vmem>>, vector<1x32xf32>
    %c128 = arith.constant 128 : index
    %c0_9 = arith.constant 0 : index
    %46 = vector.load %arg1[%c128, %c0_9] : memref<392x128xf32, #tpu.memory_space<vmem>>, vector<32x32xf32>
    %cst_10 = arith.constant dense<0.000000e+00> : vector<64x32xf32>
    %47 = tpu.matmul %44, %46, %cst_10 {dimension_numbers = #tpu.dot_dimension_numbers<[1], [0], [0], [1], [0, 0, 1, 1], [], []>} : vector<64x32xf32>, vector<32x32xf32>, vector<64x32xf32> -> vector<64x32xf32>
    %48 = vector.broadcast %45 : vector<1x32xf32> to vector<64x32xf32>
    %49 = arith.addf %47, %48 : vector<64x32xf32>
    %c385 = arith.constant 385 : index
    %c0_11 = arith.constant 0 : index
    %50 = vector.load %arg1[%c385, %c0_11] : memref<392x128xf32, #tpu.memory_space<vmem>>, vector<1x32xf32>
    %c386 = arith.constant 386 : index
    %c0_12 = arith.constant 0 : index
    %51 = vector.load %arg1[%c386, %c0_12] : memref<392x128xf32, #tpu.memory_space<vmem>>, vector<1x32xf32>
    %52 = arith.addf %8, %49 : vector<64x32xf32>
    %cst_13 = arith.constant dense<0.000000e+00> : vector<64xf32>
    %53 = vector.multi_reduction <add>, %52, %cst_13 [1] : vector<64x32xf32> to vector<64xf32>
    %54 = vector.shape_cast %53 : vector<64xf32> to vector<64x1xf32>
    %cst_14 = arith.constant 3.200000e+01 : f32
    %55 = vector.broadcast %cst_14 : f32 to vector<64x1xf32>
    %56 = arith.divf %54, %55 : vector<64x1xf32>
    %57 = vector.broadcast %56 : vector<64x1xf32> to vector<64x32xf32>
    %58 = arith.subf %52, %57 : vector<64x32xf32>
    %59 = arith.mulf %58, %58 : vector<64x32xf32>
    %cst_15 = arith.constant dense<0.000000e+00> : vector<64xf32>
    %60 = vector.multi_reduction <add>, %59, %cst_15 [1] : vector<64x32xf32> to vector<64xf32>
    %61 = vector.shape_cast %60 : vector<64xf32> to vector<64x1xf32>
    %cst_16 = arith.constant 3.200000e+01 : f32
    %62 = vector.broadcast %cst_16 : f32 to vector<64x1xf32>
    %63 = arith.divf %61, %62 : vector<64x1xf32>
    %64 = vector.broadcast %56 : vector<64x1xf32> to vector<64x32xf32>
    %65 = arith.subf %52, %64 : vector<64x32xf32>
    %cst_17 = arith.constant 9.99999974E-6 : f32
    %66 = vector.broadcast %cst_17 : f32 to vector<64x1xf32>
    %67 = arith.addf %63, %66 : vector<64x1xf32>
    %68 = math.rsqrt %67 : vector<64x1xf32>
    %69 = vector.broadcast %68 : vector<64x1xf32> to vector<64x32xf32>
    %70 = arith.mulf %65, %69 : vector<64x32xf32>
    %71 = vector.broadcast %50 : vector<1x32xf32> to vector<64x32xf32>
    %72 = arith.mulf %70, %71 : vector<64x32xf32>
    %73 = vector.broadcast %51 : vector<1x32xf32> to vector<64x32xf32>
    %74 = arith.addf %72, %73 : vector<64x32xf32>
    %c387 = arith.constant 387 : index
    %c0_18 = arith.constant 0 : index
    %75 = vector.load %arg1[%c387, %c0_18] : memref<392x128xf32, #tpu.memory_space<vmem>>, vector<1x64xf32>
    %c160 = arith.constant 160 : index
    %c0_19 = arith.constant 0 : index
    %76 = vector.load %arg1[%c160, %c0_19] : memref<392x128xf32, #tpu.memory_space<vmem>>, vector<32x64xf32>
    %cst_20 = arith.constant dense<0.000000e+00> : vector<64x64xf32>
    %77 = tpu.matmul %74, %76, %cst_20 {dimension_numbers = #tpu.dot_dimension_numbers<[1], [0], [0], [1], [0, 0, 1, 1], [], []>} : vector<64x32xf32>, vector<32x64xf32>, vector<64x64xf32> -> vector<64x64xf32>
    %78 = vector.broadcast %75 : vector<1x64xf32> to vector<64x64xf32>
    %79 = arith.addf %77, %78 : vector<64x64xf32>
    %cst_21 = arith.constant 0.000000e+00 : f32
    %80 = vector.broadcast %cst_21 : f32 to vector<64x64xf32>
    %81 = arith.maximumf %79, %80 : vector<64x64xf32>
    %c388 = arith.constant 388 : index
    %c0_22 = arith.constant 0 : index
    %82 = vector.load %arg1[%c388, %c0_22] : memref<392x128xf32, #tpu.memory_space<vmem>>, vector<1x32xf32>
    %c192 = arith.constant 192 : index
    %c0_23 = arith.constant 0 : index
    %83 = vector.load %arg1[%c192, %c0_23] : memref<392x128xf32, #tpu.memory_space<vmem>>, vector<64x32xf32>
    %cst_24 = arith.constant dense<0.000000e+00> : vector<64x32xf32>
    %84 = tpu.matmul %81, %83, %cst_24 {dimension_numbers = #tpu.dot_dimension_numbers<[1], [0], [0], [1], [0, 0, 1, 1], [], []>} : vector<64x64xf32>, vector<64x32xf32>, vector<64x32xf32> -> vector<64x32xf32>
    %85 = vector.broadcast %82 : vector<1x32xf32> to vector<64x32xf32>
    %86 = arith.addf %84, %85 : vector<64x32xf32>
    %c389 = arith.constant 389 : index
    %c0_25 = arith.constant 0 : index
    %87 = vector.load %arg1[%c389, %c0_25] : memref<392x128xf32, #tpu.memory_space<vmem>>, vector<1x32xf32>
    %c390 = arith.constant 390 : index
    %c0_26 = arith.constant 0 : index
    %88 = vector.load %arg1[%c390, %c0_26] : memref<392x128xf32, #tpu.memory_space<vmem>>, vector<1x32xf32>
    %89 = arith.addf %74, %86 : vector<64x32xf32>
    %cst_27 = arith.constant dense<0.000000e+00> : vector<64xf32>
    %90 = vector.multi_reduction <add>, %89, %cst_27 [1] : vector<64x32xf32> to vector<64xf32>
    %91 = vector.shape_cast %90 : vector<64xf32> to vector<64x1xf32>
    %cst_28 = arith.constant 3.200000e+01 : f32
    %92 = vector.broadcast %cst_28 : f32 to vector<64x1xf32>
    %93 = arith.divf %91, %92 : vector<64x1xf32>
    %94 = vector.broadcast %93 : vector<64x1xf32> to vector<64x32xf32>
    %95 = arith.subf %89, %94 : vector<64x32xf32>
    %96 = arith.mulf %95, %95 : vector<64x32xf32>
    %cst_29 = arith.constant dense<0.000000e+00> : vector<64xf32>
    %97 = vector.multi_reduction <add>, %96, %cst_29 [1] : vector<64x32xf32> to vector<64xf32>
    %98 = vector.shape_cast %97 : vector<64xf32> to vector<64x1xf32>
    %cst_30 = arith.constant 3.200000e+01 : f32
    %99 = vector.broadcast %cst_30 : f32 to vector<64x1xf32>
    %100 = arith.divf %98, %99 : vector<64x1xf32>
    %101 = vector.broadcast %93 : vector<64x1xf32> to vector<64x32xf32>
    %102 = arith.subf %89, %101 : vector<64x32xf32>
    %cst_31 = arith.constant 9.99999974E-6 : f32
    %103 = vector.broadcast %cst_31 : f32 to vector<64x1xf32>
    %104 = arith.addf %100, %103 : vector<64x1xf32>
    %105 = math.rsqrt %104 : vector<64x1xf32>
    %106 = vector.broadcast %105 : vector<64x1xf32> to vector<64x32xf32>
    %107 = arith.mulf %102, %106 : vector<64x32xf32>
    %108 = vector.broadcast %87 : vector<1x32xf32> to vector<64x32xf32>
    %109 = arith.mulf %107, %108 : vector<64x32xf32>
    %110 = vector.broadcast %88 : vector<1x32xf32> to vector<64x32xf32>
    %111 = arith.addf %109, %110 : vector<64x32xf32>
    %112 = vector.shape_cast %111 : vector<64x32xf32> to vector<8x8x32xf32>
    %cst_32 = arith.constant dense<0.000000e+00> : vector<8x32xf32>
    %113 = vector.multi_reduction <add>, %112, %cst_32 [1] : vector<8x8x32xf32> to vector<8x32xf32>
    %cst_33 = arith.constant 1.250000e-01 : f32
    %114 = vector.broadcast %cst_33 : f32 to vector<8x32xf32>
    %115 = arith.mulf %113, %114 : vector<8x32xf32>
    %cst_34 = arith.constant dense<0xFF800000> : vector<8x32xf32>
    %116 = vector.multi_reduction <maximumf>, %112, %cst_34 [1] : vector<8x8x32xf32> to vector<8x32xf32>
    %117 = tpu.concatenate %115, %116 in 1 : vector<8x32xf32>, vector<8x32xf32> -> vector<8x64xf32>
    %c391 = arith.constant 391 : index
    %c0_35 = arith.constant 0 : index
    %118 = vector.load %arg1[%c391, %c0_35] : memref<392x128xf32, #tpu.memory_space<vmem>>, vector<1x16xf32>
    %c256 = arith.constant 256 : index
    %c0_36 = arith.constant 0 : index
    %119 = vector.load %arg1[%c256, %c0_36] : memref<392x128xf32, #tpu.memory_space<vmem>>, vector<64x16xf32>
    %cst_37 = arith.constant dense<0.000000e+00> : vector<8x16xf32>
    %120 = tpu.matmul %117, %119, %cst_37 {dimension_numbers = #tpu.dot_dimension_numbers<[1], [0], [0], [1], [0, 0, 1, 1], [], []>} : vector<8x64xf32>, vector<64x16xf32>, vector<8x16xf32> -> vector<8x16xf32>
    %121 = vector.broadcast %118 : vector<1x16xf32> to vector<8x16xf32>
    %122 = arith.addf %120, %121 : vector<8x16xf32>
    %c0_38 = arith.constant 0 : index
    %c0_39 = arith.constant 0 : index
    %123 = vector.load %arg2[%c0_38, %c0_39] : memref<8x16xf32, #tpu.memory_space<vmem>>, vector<8x16xf32>
    tpu.vector_store %arg2[%c0_38, %c0_39], %122 {strides = array<i32>} : memref<8x16xf32, #tpu.memory_space<vmem>>, vector<8x16xf32>,
    return
  }
}

</mosaic_0001>

<bundles_post_ra>
// kernel: context_transformer_forward.1
= control target key start
LH: loop header
LB: loop body
LE: loop exit
PB: predicated region body
PF: predicated region fallthrough
CT: control target
= control target key end

     0   :  { %7 = vsyncpa [#allocation3], 0  ;;  %s3607_s0 = inlined_call_operand.vmem [shape: s32[64,1], index: 0, kind: input, shape index: {}]   ;;  %s3608_s1 = inlined_call_operand.hbm [shape: f32[392,128], index: 1, kind: input, shape index: {}]   ;;  %s3609_s2 = inlined_call_operand.hbm [shape: f32[8,16], index: 2, kind: output, shape index: {}]  }
   0x1   :  { %8 = vsyncpa [#allocation4], 0  ;;  %s2940_s9 = smov [#allocation2]   ;;  %s2892_s13 = scalar_lea.hbm %s3608_s1, 6272 }
   0x2   :  { %s16_s10 = sshll.u32 %s2940_s9, 4  ;;  %p2893_p0 = scmp.ne.s32.totalorder %s3608_s1, %s2892_s13  ;;  %s17_s10 = int_to_ptr.vmem [resolvable:$true] %s16_s10 }
   0x3   :  { %p2896_p1 = scmp.lt.u32.totalorder %s2892_s13, %s3608_s1 }
   0x5   :  { %p2898_p2 = pnand %p2896_p1, %p2893_p0 }
   0x7   :  { %2901 = shalt.err (!%p2898_p2)
}
   0x8   :  { %s2902_s18 = scalar_lea.vmem %s17_s10, 6272  ;;  %p2907_p4 = scmp.lt.s32.totalorder %s17_s10, %s17_s10 }
   0x9   :  { %p2903_p3 = scmp.ne.s32.totalorder %s17_s10, %s2902_s18  ;;  %p2908_p5 = scmp.lt.s32.totalorder %s2902_s18, %s2902_s18 }
   0xb   :  { %p2909_p6 = por %p2908_p5, %p2907_p4 }
   0xd   :  { %p2910_p7 = pnand %p2909_p6, %p2903_p3 }
   0xf   :  { %2913 = shalt.err (!%p2910_p7)
}
  0x10   :  { %s2941_s19 = smov 128   ;;  %s2942_s20 = smov 8  }
  0x11   :  { %22 = dma.hbm_to_vmem [thread:$0]  %s3608_s1, 6272, %s17_s10, [#allocation3], %s2941_s19, %s2941_s19, %s2942_s20  }
  0x12   :  { %2936 = dma.done.wait [#allocation3], 6272  }
  0x13   :  { %2937 = vsyncadd [#allocation3], 4294961024  ;;  %v2943_v0 = vmov 0   ;;  %v28_v1 = vld [vmem:[%s3607_s0 + $0x10] sm:$0xff]  ;;  %v26_v2 = vld [vmem:[%s3607_s0] sm:$0xff]  ;;  %v34_v33 = vlaneseq  ;;  %v2944_v37 = vmov 1.0  }
  0x14   :  { %2715 = vset.pattern.permute.xlu1 %v2943_v0  ;;  %2714 = vset.pattern.permute.xlu0 %v2943_v0  ;;  %v29_v3 = vld [vmem:[%s3607_s0 + $0x18] sm:$0xff]  ;;  %v27_v4 = vld [vmem:[%s3607_s0 + $0x8] sm:$0xff]  ;;  %v84_v5 = vld [vmem:[#allocation2] sm:$0xff]  ;;  %s2946_s10 = smov 64   ;;  %s2947_s11 = smov 96   ;;  %vm269_vm8 = vcmask 130048  }
  0x15   :  { %43 = vperm.xlu1 %2715, %v28_v1   ;;  %37 = vperm.xlu0 %2714, %v26_v2   ;;  %v85_v6 = vld [vmem:[#allocation2 + $0x8] sm:$0xff]  ;;  %v86_v7 = vld [vmem:[#allocation2 + $0x10] sm:$0xff]  ;;  %v87_v8 = vld [vmem:[#allocation2 + $0x18] sm:$0xff]  ;;  %v35_v34 = vand.u32 127, %v34_v33  ;;  %s2948_s12 = smov 32   ;;  %vm576_vm10 = vcmask 523264  }
  0x16   :  { %v2544_v9 = vpack.c.bf16 %v85_v6, %v84_v5  ;;  %v2548_v10 = vpack.c.bf16 %v87_v8, %v86_v7  ;;  %v88_v11 = vld [vmem:[#allocation2 + $0x20] sm:$0xff]  ;;  %v89_v12 = vld [vmem:[#allocation2 + $0x28] sm:$0xff]  ;;  %v90_v16 = vld [vmem:[#allocation2 + $0x30] sm:$0xff]  ;;  %s2949_s13 = smov 16   ;;  %vm1108_vm11 = vcmask 261120   ;;  %vm1931_vm12 = vcmask 1041409  }
  0x17   :  { %v31_v13 = vld [vmem:[%s3607_s0 + $0x28] sm:$0xff]  ;;  %v30_v14 = vld [vmem:[%s3607_s0 + $0x20] sm:$0xff]  ;;  %v2552_v15 = vpack.c.bf16 %v89_v12, %v88_v11  ;;  %v91_v17 = vld [vmem:[#allocation2 + $0x38] sm:$0xff]  ;;  %vm1933_vm13 = vcmask 1042434   ;;  %vm1935_vm14 = vcmask 1043459   ;;  %vm1937_vm15 = vcmask 1044484  }
  0x18   :  { %2545 = vmatprep.subr.bf16.mxu0 %v2544_v9  ;;  %v33_v18 = vld [vmem:[%s3607_s0 + $0x38] sm:$0xff]  ;;  %v32_v19 = vld [vmem:[%s3607_s0 + $0x30] sm:$0xff]  ;;  %v2556_v20 = vpack.c.bf16 %v91_v17, %v90_v16  ;;  %v92_v21 = vld [vmem:[#allocation2 + $0x40] sm:$0xff]  ;;  %s2945_s0 = smov 112   ;;  %s2953_s14 = smov [#allocation5]  }
  0x19   :  { %46 = vperm.xlu1 %2715, %v29_v3   ;;  %40 = vperm.xlu0 %2714, %v27_v4   ;;  %v93_v22 = vld [vmem:[#allocation2 + $0x48] sm:$0xff]  ;;  %v94_v24 = vld [vmem:[#allocation2 + $0x50] sm:$0xff]  ;;  %v95_v25 = vld [vmem:[#allocation2 + $0x58] sm:$0xff]  ;;  %s2058_s15 = sshll.u32 %s2953_s14, 4  ;;  %s2059_s15 = int_to_ptr.vmem [resolvable:$true] %s2058_s15 }
  0x1a   :  { %2547 = vmatpush3.bf16.msra.mxu0 %v2544_v9  ;;  %v2560_v23 = vpack.c.bf16 %v93_v22, %v92_v21  ;;  %v2564_v26 = vpack.c.bf16 %v95_v25, %v94_v24  ;;  %v96_v27 = vld [vmem:[#allocation2 + $0x60] sm:$0xff]  ;;  %v97_v28 = vld [vmem:[#allocation2 + $0x68] sm:$0xff]  ;;  %v98_v30 = vld [vmem:[#allocation2 + $0x70] sm:$0xff]  ;;  %s2914_s16 = scalar_lea.vmem %s2059_s15, 128  ;;  %p2919_p9 = scmp.lt.s32.totalorder %s2059_s15, %s2059_s15 }
  0x1b   :  { %2549 = vmatprep.subr.bf16.mxu0 %v2548_v10  ;;  %v2568_v29 = vpack.c.bf16 %v97_v28, %v96_v27  ;;  %v99_v31 = vld [vmem:[#allocation2 + $0x78] sm:$0xff]  ;;  %vm3075_vm9 = vmpackc.low %vm269_vm8, %vm269_vm8  ;;  %p2915_p8 = scmp.ne.s32.totalorder %s2059_s15, %s2914_s16  ;;  %p2920_p10 = scmp.lt.s32.totalorder %s2914_s16, %s2914_s16 }
  0x1c   :  { %v2572_v32 = vpack.c.bf16 %v99_v31, %v98_v30 }
  0x1d   :  { %52 = vperm.xlu1 %2715, %v31_v13   ;;  %49 = vperm.xlu0 %2714, %v30_v14   ;;  %p2921_p11 = por %p2920_p10, %p2919_p9 }
  0x1e   :  { %2551 = vmatpush3.bf16.msra.mxu0 %v2548_v10 }
  0x1f   :  { %2553 = vmatprep.subr.bf16.mxu0 %v2552_v15  ;;  %p2922_p12 = pnand %p2921_p11, %p2915_p8 }
  0x21   :  { %58 = vperm.xlu1 %2715, %v33_v18   ;;  %55 = vperm.xlu0 %2714, %v32_v19  }
  0x22   :  { %2555 = vmatpush3.bf16.msra.mxu0 %v2552_v15 }
  0x23   :  { %2557 = vmatprep.subr.bf16.mxu0 %v2556_v20 }
  0x26   :  { %2559 = vmatpush3.bf16.msra.mxu0 %v2556_v20 }
  0x27   :  { %2561 = vmatprep.subr.bf16.mxu0 %v2560_v23 }
  0x2a   :  { %2563 = vmatpush3.bf16.msra.mxu0 %v2560_v23 }
  0x2b   :  { %2565 = vmatprep.subr.bf16.mxu0 %v2564_v26 }
  0x2e   :  { %2567 = vmatpush3.bf16.msra.mxu0 %v2564_v26 }
  0x2f   :  { %2569 = vmatprep.subr.bf16.mxu0 %v2568_v29 }
  0x32   :  { %2571 = vmatpush3.bf16.msra.mxu0 %v2568_v29 }
  0x33   :  { %2573 = vmatprep.subr.bf16.mxu0 %v2572_v32 }
  0x36   :  { %2575 = vmatpush3.bf16.msra.mxu0 %v2572_v32 }
  0x94   :  { %v44_v35 = vpop.permute.xlu1 %43  ;;  %v38_v36 = vpop.permute.xlu0 %37 }
  0x95   :  { %vm60_vm0 = vcmp.eq.s32.totalorder %v35_v34, %v38_v36  ;;  %vm62_vm1 = vcmp.eq.s32.totalorder %v35_v34, %v44_v35 }
  0x96   :  { %2333 = vmatprep.mubr.msk.f32.mxu0 %vm60_vm0, %v2944_v37  ;;  %vm1939_vm0 = vcmask 1045509  }
  0x98   :  { %v47_v38 = vpop.permute.xlu1 %46  ;;  %v41_v39 = vpop.permute.xlu0 %40 }
  0x99   :  { %vm61_vm2 = vcmp.eq.s32.totalorder %v35_v34, %v41_v39  ;;  %vm63_vm3 = vcmp.eq.s32.totalorder %v35_v34, %v47_v38 }
  0x9a   :  { %2334 = vmatmul.mubr.msk.f32.vlgmr.msra.gmra.mrb[0].mxu0 %vm61_vm2, %v2944_v37  ;;  %vm1943_vm2 = vcmask 1047559  }
  0x9b   :  { %2336 = vmatprep.mubr.msk.f32.mxu0 %vm62_vm1, %v2944_v37  ;;  %vm1941_vm1 = vcmask 1046534  }
  0x9c   :  { %v53_v40 = vpop.permute.xlu1 %52  ;;  %v50_v41 = vpop.permute.xlu0 %49 }
  0x9d   :  { %vm64_vm4 = vcmp.eq.s32.totalorder %v35_v34, %v50_v41  ;;  %vm65_vm5 = vcmp.eq.s32.totalorder %v35_v34, %v53_v40 }
  0x9e   :  { %2337 = vmatmul.mubr.msk.f32.gmra.mrb[2].mxu0 %vm63_vm3, %v2944_v37  ;;  %vm2951_vm3 = vmmov 0  }
  0x9f   :  { %2339 = vmatprep.mubr.msk.f32.mxu0 %vm64_vm4, %v2944_v37 }
  0xa0   :  { %v56_v42 = vpop.permute.xlu0 %55  ;;  %v59_v43 = vpop.permute.xlu1 %58 }
  0xa1   :  { %vm66_vm6 = vcmp.eq.s32.totalorder %v35_v34, %v56_v42  ;;  %vm67_vm7 = vcmp.eq.s32.totalorder %v35_v34, %v59_v43 }
  0xa2   :  { %2340 = vmatmul.mubr.msk.f32.gmra.mrb[4].mxu0 %vm65_vm5, %v2944_v37 }
  0xa3   :  { %2342 = vmatprep.mubr.msk.f32.mxu0 %vm66_vm6, %v2944_v37 }
  0xa6   :  { %2343 = vmatmul.mubr.msk.f32.gmra.mrb[6].mxu0 %vm67_vm7, %v2944_v37 }
 0x16d   :  { %v3005_v44 = vpop.f32.mrb[0].mxu0 }
 0x16e   :  { %215 = vrot.lane.b32.xlu1 %v3005_v44, %s2945_s0  ;;  %v3008_v45 = vpop.f32.mrb[1].mxu0 }
 0x16f   :  { %213 = vrot.lane.b32.xlu0 %v3008_v45, %s2945_s0  ;;  %v3013_v46 = vpack.i.bf16 %v3005_v44, %v3008_v45 }
 0x171   :  { %v3015_v47 = vpop.f32.mrb[2].mxu0 }
 0x172   :  { %219 = vrot.lane.b32.xlu1 %v3015_v47, %s2945_s0  ;;  %v3018_v48 = vpop.f32.mrb[3].mxu0 }
 0x173   :  { %217 = vrot.lane.b32.xlu0 %v3018_v48, %s2945_s0  ;;  %v3023_v49 = vpack.i.bf16 %v3015_v47, %v3018_v48 }
 0x175   :  { %v3025_v50 = vpop.f32.mrb[4].mxu0 }
 0x176   :  { %223 = vrot.lane.b32.xlu1 %v3025_v50, %s2945_s0  ;;  %v3028_v51 = vpop.f32.mrb[5].mxu0 }
 0x177   :  { %221 = vrot.lane.b32.xlu0 %v3028_v51, %s2945_s0  ;;  %v3033_v52 = vpack.i.bf16 %v3025_v50, %v3028_v51 }
 0x179   :  { %v3035_v53 = vpop.f32.mrb[6].mxu0 }
 0x17a   :  { %227 = vrot.lane.b32.xlu1 %v3035_v53, %s2945_s0  ;;  %v3038_v54 = vpop.f32.mrb[7].mxu0 }
 0x17b   :  { %225 = vrot.lane.b32.xlu0 %v3038_v54, %s2945_s0  ;;  %v3043_v55 = vpack.i.bf16 %v3035_v53, %v3038_v54 }
 0x17e   :  { %2722 = vrot.lane.b32.xlu1 %v3023_v49, %s2946_s10 }
 0x17f   :  { %2717 = vrot.lane.b32.xlu0 %v3013_v46, %s2946_s10 }
 0x183   :  { %2727 = vrot.lane.b32.xlu0 %v3033_v52, %s2946_s10 }
 0x187   :  { %2737 = vrot.lane.b32.xlu0 %v3043_v55, %s2946_s10 }
 0x1e0   :  { %v216_v56 = vpop.permute.xlu1 %215 }
 0x1e1   :  { %v214_v57 = vpop.permute.xlu0 %213 }
 0x1e2   :  { %v3053_v58 = vpack.i.bf16 %v216_v56, %v214_v57 }
 0x1e4   :  { %v220_v59 = vpop.permute.xlu1 %219  ;;  %2732 = vrot.lane.b32.xlu1 %v3053_v58, %s2946_s10 }
 0x1e5   :  { %v218_v60 = vpop.permute.xlu0 %217 }
 0x1e6   :  { %v3057_v61 = vpack.i.bf16 %v220_v59, %v218_v60 }
 0x1e8   :  { %v224_v62 = vpop.permute.xlu1 %223  ;;  %2742 = vrot.lane.b32.xlu1 %v3057_v61, %s2946_s10 }
 0x1e9   :  { %v222_v63 = vpop.permute.xlu0 %221 }
 0x1ea   :  { %v3061_v0 = vpack.i.bf16 %v224_v62, %v222_v63 }
 0x1ec   :  { %v228_v1 = vpop.permute.xlu1 %227  ;;  %237 = vrot.lane.b32.xlu1 %v3008_v45, %s2947_s11  ;;  %2747 = vrot.lane.b32.xlu0 %v3061_v0, %s2946_s10 }
 0x1ed   :  { %v226_v2 = vpop.permute.xlu0 %225 }
 0x1ee   :  { %v3071_v5 = vpack.i.bf16 %v228_v1, %v226_v2 }
 0x1f0   :  { %v2723_v3 = vpop.permute.xlu1 %2722  ;;  %241 = vrot.lane.b32.xlu1 %v3018_v48, %s2947_s11  ;;  %239 = vrot.lane.b32.xlu0 %v3005_v44, %s2947_s11 }
 0x1f1   :  { %v2718_v4 = vpop.permute.xlu0 %2717  ;;  %v2725_v8 = vunpack.i.h.bf16 %v2723_v3  ;;  %v2724_v9 = vunpack.i.l.bf16 %v2723_v3 }
 0x1f2   :  { %v2720_v6 = vunpack.i.h.bf16 %v2718_v4  ;;  %v2719_v7 = vunpack.i.l.bf16 %v2718_v4 }
 0x1f3   :  { %v2582_v12 = vpack.c.bf16 %v2725_v8, %v2724_v9 }
 0x1f4   :  { %243 = vrot.lane.b32.xlu0 %v3015_v47, %s2947_s11  ;;  %2752 = vrot.lane.b32.xlu1 %v3071_v5, %s2946_s10  ;;  %v2576_v11 = vpack.c.bf16 %v2720_v6, %v2719_v7 }
 0x1f5   :  { %v2728_v13 = vpop.permute.xlu0 %2727 }
 0x1f6   :  { %2578 = vmatprep.subr.msk.bf16.mxu1 %vm3075_vm9, %v2576_v11  ;;  %v2730_v14 = vunpack.i.h.bf16 %v2728_v13  ;;  %v2729_v15 = vunpack.i.l.bf16 %v2728_v13 }
 0x1f7   :  { %2581 = vmatpush3.bf16.xpose.msk.msra.mxu1 %vm3075_vm9, %v2576_v11 }
 0x1f8   :  { %245 = vrot.lane.b32.xlu0 %v3028_v51, %s2947_s11  ;;  %247 = vrot.lane.b32.xlu1 %v3025_v50, %s2947_s11  ;;  %v2588_v16 = vpack.c.bf16 %v2730_v14, %v2729_v15 }
 0x1f9   :  { %2584 = vmatprep.subr.msk.bf16.mxu1 %vm3075_vm9, %v2582_v12  ;;  %v2738_v17 = vpop.permute.xlu0 %2737 }
 0x1fa   :  { %v2740_v18 = vunpack.i.h.bf16 %v2738_v17  ;;  %v2739_v19 = vunpack.i.l.bf16 %v2738_v17  ;;  %v230_v17 = vld [vmem:[#allocation2 + $0x148] sm:$0xff] }
 0x1fc   :  { %249 = vrot.lane.b32.xlu0 %v3038_v54, %s2947_s11  ;;  %251 = vrot.lane.b32.xlu1 %v3035_v53, %s2947_s11  ;;  %v2594_v20 = vpack.c.bf16 %v2740_v18, %v2739_v19  ;;  %v229_v18 = vld [vmem:[#allocation2 + $0x140] sm:$0xff] }
 0x1ff   :  { %2587 = vmatpush3.bf16.xpose.msk.msra.mxu1 %vm3075_vm9, %v2582_v12 }
 0x200   :  { %407 = vrot.lane.b32.xlu0 %v214_v57, %s2947_s11  ;;  %409 = vrot.lane.b32.xlu1 %v216_v56, %s2947_s11 }
 0x201   :  { %2590 = vmatprep.subr.msk.bf16.mxu1 %vm3075_vm9, %v2588_v16 }
 0x204   :  { %411 = vrot.lane.b32.xlu0 %v218_v60, %s2947_s11  ;;  %413 = vrot.lane.b32.xlu1 %v220_v59, %s2947_s11 }
 0x207   :  { %2593 = vmatpush3.bf16.xpose.msk.msra.mxu1 %vm3075_vm9, %v2588_v16 }
 0x208   :  { %415 = vrot.lane.b32.xlu0 %v222_v63, %s2947_s11  ;;  %417 = vrot.lane.b32.xlu1 %v224_v62, %s2947_s11 }
 0x209   :  { %2596 = vmatprep.subr.msk.bf16.mxu1 %vm3075_vm9, %v2594_v20 }
 0x20c   :  { %419 = vrot.lane.b32.xlu0 %v226_v2, %s2947_s11  ;;  %421 = vrot.lane.b32.xlu1 %v228_v1, %s2947_s11 }
 0x20f   :  { %2599 = vmatpush3.bf16.xpose.msk.msra.mxu1 %vm3075_vm9, %v2594_v20 }
 0x210   :  { %2762 = vrot.lane.b32.xlu0 %v3023_v49, %s2948_s12  ;;  %2757 = vrot.lane.b32.xlu1 %v3013_v46, %s2948_s12 }
 0x214   :  { %2767 = vrot.lane.b32.xlu1 %v3033_v52, %s2948_s12 }
 0x218   :  { %2772 = vrot.lane.b32.xlu1 %v3043_v55, %s2948_s12 }
 0x256   :  { %v2733_v21 = vpop.permute.xlu1 %2732 }
 0x257   :  { %v2735_v22 = vunpack.i.h.bf16 %v2733_v21  ;;  %v2734_v23 = vunpack.i.l.bf16 %v2733_v21 }
 0x259   :  { %v2600_v24 = vpack.c.bf16 %v2735_v22, %v2734_v23  ;;  %v232_v23 = vld [vmem:[#allocation2 + $0x158] sm:$0xff] }
 0x25a   :  { %v2743_v25 = vpop.permute.xlu1 %2742 }
 0x25b   :  { %v2745_v26 = vunpack.i.h.bf16 %v2743_v25  ;;  %v2744_v27 = vunpack.i.l.bf16 %v2743_v25  ;;  %2602 = vmatprep.subr.msk.bf16.mxu0 %vm3075_vm9, %v2600_v24 }
 0x25c   :  { %2605 = vmatpush3.bf16.xpose.msk.msra.mxu0 %vm3075_vm9, %v2600_v24 }
 0x25d   :  { %v2606_v28 = vpack.c.bf16 %v2745_v26, %v2744_v27 }
 0x25e   :  { %v238_v29 = vpop.permute.xlu1 %237  ;;  %v2748_v30 = vpop.permute.xlu0 %2747 }
 0x25f   :  { %v2750_v31 = vunpack.i.h.bf16 %v2748_v30  ;;  %v2749_v32 = vunpack.i.l.bf16 %v2748_v30  ;;  %2361 = vmatprep.mubr.msk.f32.mxu1 %vm269_vm8, %v238_v29  ;;  %2608 = vmatprep.subr.msk.bf16.mxu0 %vm3075_vm9, %v2606_v28  ;;  %v231_v29 = vld [vmem:[#allocation2 + $0x150] sm:$0xff] }
 0x261   :  { %v2612_v35 = vpack.c.bf16 %v2750_v31, %v2749_v32  ;;  %v233_v32 = vld [vmem:[#allocation2 + $0x160] sm:$0xff] }
 0x262   :  { %v242_v33 = vpop.permute.xlu1 %241  ;;  %v240_v34 = vpop.permute.xlu0 %239 }
 0x263   :  { %2362 = vmatmul.mubr.msk.f32.vlgmr.msra.gmra.mrb[0].mxu1 %vm269_vm8, %v240_v34 }
 0x264   :  { %2364 = vmatprep.mubr.msk.f32.mxu1 %vm269_vm8, %v242_v33  ;;  %2611 = vmatpush3.bf16.xpose.msk.msra.mxu0 %vm3075_vm9, %v2606_v28  ;;  %v234_v33 = vld [vmem:[#allocation2 + $0x168] sm:$0xff] }
 0x265   :  { %2614 = vmatprep.subr.msk.bf16.mxu0 %vm3075_vm9, %v2612_v35 }
 0x266   :  { %v2753_v36 = vpop.permute.xlu1 %2752  ;;  %v244_v37 = vpop.permute.xlu0 %243 }
 0x267   :  { %v2755_v38 = vunpack.i.h.bf16 %v2753_v36  ;;  %v2754_v39 = vunpack.i.l.bf16 %v2753_v36  ;;  %2365 = vmatmul.mubr.msk.f32.gmra.mrb[2].mxu1 %vm269_vm8, %v244_v37 }
 0x269   :  { %v2618_v42 = vpack.c.bf16 %v2755_v38, %v2754_v39  ;;  %v235_v39 = vld [vmem:[#allocation2 + $0x170] sm:$0xff] }
 0x26a   :  { %v248_v40 = vpop.permute.xlu1 %247  ;;  %v246_v41 = vpop.permute.xlu0 %245 }
 0x26b   :  { %2367 = vmatprep.mubr.msk.f32.mxu1 %vm269_vm8, %v246_v41 }
 0x26c   :  { %2368 = vmatmul.mubr.msk.f32.gmra.mrb[4].mxu1 %vm269_vm8, %v248_v40  ;;  %2617 = vmatpush3.bf16.xpose.msk.msra.mxu0 %vm3075_vm9, %v2612_v35  ;;  %v236_v40 = vld [vmem:[#allocation2 + $0x178] sm:$0xff] }
 0x26d   :  { %2620 = vmatprep.subr.msk.bf16.mxu0 %vm3075_vm9, %v2618_v42 }
 0x26e   :  { %v252_v43 = vpop.permute.xlu1 %251  ;;  %v250_v46 = vpop.permute.xlu0 %249 }
 0x26f   :  { %2370 = vmatprep.mubr.msk.f32.mxu1 %vm269_vm8, %v250_v46 }
 0x270   :  { %2371 = vmatmul.mubr.msk.f32.gmra.mrb[6].mxu1 %vm269_vm8, %v252_v43 }
 0x272   :  { %v410_v49 = vpop.permute.xlu1 %409  ;;  %v408_v52 = vpop.permute.xlu0 %407 }
 0x273   :  { %2389 = vmatprep.mubr.msk.f32.mxu0 %vm269_vm8, %v408_v52 }
 0x274   :  { %2623 = vmatpush3.bf16.xpose.msk.msra.mxu0 %vm3075_vm9, %v2618_v42 }
 0x276   :  { %v414_v55 = vpop.permute.xlu1 %413  ;;  %v412_v56 = vpop.permute.xlu0 %411 }
 0x27a   :  { %v418_v57 = vpop.permute.xlu1 %417  ;;  %v416_v59 = vpop.permute.xlu0 %415 }
 0x27b   :  { %2390 = vmatmul.mubr.msk.f32.vlgmr.msra.gmra.mrb[8].mxu0 %vm269_vm8, %v410_v49 }
 0x27c   :  { %2392 = vmatprep.mubr.msk.f32.mxu0 %vm269_vm8, %v412_v56 }
 0x27e   :  { %v422_v60 = vpop.permute.xlu1 %421  ;;  %v420_v62 = vpop.permute.xlu0 %419 }
 0x27f   :  { %2393 = vmatmul.mubr.msk.f32.gmra.mrb[10].mxu0 %vm269_vm8, %v414_v55 }
 0x280   :  { %2395 = vmatprep.mubr.msk.f32.mxu0 %vm269_vm8, %v416_v59 }
 0x282   :  { %v2758_v63 = vpop.permute.xlu1 %2757  ;;  %v2763_v1 = vpop.permute.xlu0 %2762 }
 0x283   :  { %v2760_v2 = vunpack.i.h.bf16 %v2758_v63  ;;  %v2759_v3 = vunpack.i.l.bf16 %v2758_v63  ;;  %v2765_v4 = vunpack.i.h.bf16 %v2763_v1  ;;  %v2764_v6 = vunpack.i.l.bf16 %v2763_v1  ;;  %2396 = vmatmul.mubr.msk.f32.gmra.mrb[12].mxu0 %vm269_vm8, %v418_v57 }
 0x284   :  { %2398 = vmatprep.mubr.msk.f32.mxu0 %vm269_vm8, %v420_v62 }
 0x285   :  { %v2624_v7 = vpack.c.bf16 %v2760_v2, %v2759_v3  ;;  %v2628_v9 = vpack.c.bf16 %v2765_v4, %v2764_v6 }
 0x286   :  { %v2768_v8 = vpop.permute.xlu1 %2767 }
 0x287   :  { %v2770_v10 = vunpack.i.h.bf16 %v2768_v8  ;;  %v2769_v11 = vunpack.i.l.bf16 %v2768_v8  ;;  %2399 = vmatmul.mubr.msk.f32.gmra.mrb[14].mxu0 %vm269_vm8, %v422_v60  ;;  %2625 = vmatprep.subr.bf16.mxu1 %v2624_v7 }
 0x288   :  { %2627 = vmatpush3.bf16.msra.mxu1 %v2624_v7 }
 0x289   :  { %2629 = vmatprep.subr.bf16.mxu1 %v2628_v9  ;;  %v2632_v13 = vpack.c.bf16 %v2770_v10, %v2769_v11 }
 0x28a   :  { %v2773_v12 = vpop.permute.xlu1 %2772 }
 0x28b   :  { %v2775_v14 = vunpack.i.h.bf16 %v2773_v12  ;;  %v2774_v15 = vunpack.i.l.bf16 %v2773_v12 }
 0x28c   :  { %2631 = vmatpush3.bf16.msra.mxu1 %v2628_v9 }
 0x28d   :  { %2633 = vmatprep.subr.bf16.mxu1 %v2632_v13  ;;  %v2636_v16 = vpack.c.bf16 %v2775_v14, %v2774_v15 }
 0x290   :  { %2635 = vmatpush3.bf16.msra.mxu1 %v2632_v13 }
 0x291   :  { %2637 = vmatprep.subr.bf16.mxu1 %v2636_v16 }
 0x294   :  { %2639 = vmatpush3.bf16.msra.mxu1 %v2636_v16 }
 0x336   :  { %v2363_v19 = vpop.f32.mrb[0].mxu1 }
 0x337   :  { %v3155_v20 = vadd.f32 %v2363_v19, %v230_v17  ;;  %v368_v21 = vpop.f32.mrb[1].mxu1 }
 0x338   :  { %v3157_v22 = vadd.f32 %v368_v21, %v229_v18 }
 0x339   :  { %v580_v24 = vsel %vm576_vm10, %v3155_v20, -inf }
 0x33a   :  { %581 = vmax.xlane.f32.xlu1 %v580_v24  ;;  %v2366_v25 = vpop.f32.mrb[2].mxu1  ;;  %v577_v26 = vsel %vm576_vm10, %v3157_v22, -inf }
 0x33b   :  { %v3163_v27 = vadd.f32 %v2366_v25, %v232_v23  ;;  %v378_v28 = vpop.f32.mrb[3].mxu1  ;;  %578 = vmax.xlane.f32.xlu0 %v577_v26 }
 0x33c   :  { %v3167_v31 = vadd.f32 %v378_v28, %v231_v29 }
 0x33d   :  { %v586_v30 = vsel %vm576_vm10, %v3163_v27, -inf }
 0x33e   :  { %v583_v38 = vsel %vm576_vm10, %v3167_v31, -inf }
 0x33f   :  { %v2369_v34 = vpop.f32.mrb[4].mxu1  ;;  %587 = vmax.xlane.f32.xlu0 %v586_v30 }
 0x340   :  { %v388_v35 = vpop.f32.mrb[5].mxu1  ;;  %v3171_v37 = vadd.f32 %v2369_v34, %v234_v33 }
 0x341   :  { %v3169_v36 = vadd.f32 %v388_v35, %v233_v32 }
 0x342   :  { %v592_v52 = vsel %vm576_vm10, %v3171_v37, -inf }
 0x343   :  { %v2372_v41 = vpop.f32.mrb[6].mxu1  ;;  %584 = vmax.xlane.f32.xlu0 %v583_v38  ;;  %v589_v42 = vsel %vm576_vm10, %v3169_v36, -inf }
 0x344   :  { %v398_v43 = vpop.f32.mrb[7].mxu1  ;;  %590 = vmax.xlane.f32.xlu1 %v589_v42  ;;  %v3179_v49 = vadd.f32 %v2372_v41, %v236_v40 }
 0x345   :  { %v3177_v46 = vadd.f32 %v398_v43, %v235_v39 }
 0x346   :  { %v598_v56 = vsel %vm576_vm10, %v3179_v49, -inf }
 0x347   :  { %593 = vmax.xlane.f32.xlu0 %v592_v52  ;;  %v595_v55 = vsel %vm576_vm10, %v3177_v46, -inf }
 0x348   :  { %596 = vmax.xlane.f32.xlu1 %v595_v55 }
 0x34b   :  { %599 = vmax.xlane.f32.xlu0 %v598_v56 }
 0x34e   :  { %v2391_v57 = vpop.f32.mrb[8].mxu0 }
 0x34f   :  { %v3187_v59 = vadd.f32 %v2391_v57, %v230_v17  ;;  %v537_v60 = vpop.f32.mrb[9].mxu0 }
 0x350   :  { %v3189_v62 = vadd.f32 %v537_v60, %v229_v18 }
 0x351   :  { %v604_v63 = vsel %vm576_vm10, %v3187_v59, -inf }
 0x352   :  { %v2394_v1 = vpop.f32.mrb[10].mxu0  ;;  %605 = vmax.xlane.f32.xlu0 %v604_v63  ;;  %v601_v2 = vsel %vm576_vm10, %v3189_v62, -inf }
 0x353   :  { %v3195_v3 = vadd.f32 %v2394_v1, %v232_v23  ;;  %v547_v4 = vpop.f32.mrb[11].mxu0  ;;  %602 = vmax.xlane.f32.xlu1 %v601_v2 }
 0x354   :  { %v3197_v6 = vadd.f32 %v547_v4, %v231_v29 }
 0x355   :  { %v610_v7 = vsel %vm576_vm10, %v3195_v3, -inf }
 0x356   :  { %v2397_v8 = vpop.f32.mrb[12].mxu0  ;;  %611 = vmax.xlane.f32.xlu0 %v610_v7  ;;  %v607_v9 = vsel %vm576_vm10, %v3197_v6, -inf }
 0x357   :  { %v3203_v10 = vadd.f32 %v2397_v8, %v234_v33  ;;  %v557_v11 = vpop.f32.mrb[13].mxu0  ;;  %608 = vmax.xlane.f32.xlu1 %v607_v9 }
 0x358   :  { %v3205_v12 = vadd.f32 %v557_v11, %v233_v32 }
 0x359   :  { %v616_v13 = vsel %vm576_vm10, %v3203_v10, -inf }
 0x35a   :  { %v2400_v14 = vpop.f32.mrb[14].mxu0  ;;  %617 = vmax.xlane.f32.xlu0 %v616_v13  ;;  %v613_v15 = vsel %vm576_vm10, %v3205_v12, -inf }
 0x35b   :  { %v3211_v16 = vadd.f32 %v2400_v14, %v236_v40  ;;  %v567_v17 = vpop.f32.mrb[15].mxu0  ;;  %614 = vmax.xlane.f32.xlu1 %v613_v15 }
 0x35c   :  { %v3213_v18 = vadd.f32 %v567_v17, %v235_v39 }
 0x35d   :  { %v622_v19 = vsel %vm576_vm10, %v3211_v16, -inf }
 0x35e   :  { %623 = vmax.xlane.f32.xlu0 %v622_v19  ;;  %v619_v21 = vsel %vm576_vm10, %v3213_v18, -inf }
 0x35f   :  { %620 = vmax.xlane.f32.xlu1 %v619_v21 }
 0x370   :  { %2782 = vrot.lane.b32.xlu1 %v3057_v61, %s2948_s12 }
 0x374   :  { %2777 = vrot.lane.b32.xlu0 %v3053_v58, %s2948_s12 }
 0x3c7   :  { %v582_v23 = vpop.xlane.xlu1 %581 }
 0x3c8   :  { %v626_v24 = vsub.f32 %v3155_v20, %v582_v23  ;;  %v579_v25 = vpop.xlane.xlu0 %578 }
 0x3c9   :  { %v625_v26 = vsub.f32 %v3157_v22, %v579_v25 }
 0x3ca   :  { %v643_v28 = vmul.f32 1.442695, %v626_v24 }
 0x3cb   :  { %v641_v29 = vmul.f32 1.442695, %v625_v26 }
 0x3cc   :  { %2796 = vpow2.f32 %v643_v28  ;;  %v588_v30 = vpop.xlane.xlu0 %587 }
 0x3cd   :  { %2798 = vpow2.f32 %v641_v29  ;;  %v628_v32 = vsub.f32 %v3163_v27, %v588_v30 }
 0x3cf   :  { %v647_v33 = vmul.f32 1.442695, %v628_v32 }
 0x3d0   :  { %v585_v34 = vpop.xlane.xlu0 %584 }
 0x3d1   :  { %2800 = vpow2.f32 %v647_v33  ;;  %v627_v61 = vsub.f32 %v3167_v31, %v585_v34  ;;  %v591_v35 = vpop.xlane.xlu1 %590 }
 0x3d2   :  { %v629_v58 = vsub.f32 %v3169_v36, %v591_v35 }
 0x3d3   :  { %v645_v38 = vmul.f32 1.442695, %v627_v61 }
 0x3d4   :  { %v649_v20 = vmul.f32 1.442695, %v629_v58  ;;  %v594_v39 = vpop.xlane.xlu0 %593 }
 0x3d5   :  { %2802 = vpow2.f32 %v645_v38  ;;  %v630_v22 = vsub.f32 %v3171_v37, %v594_v39  ;;  %v597_v40 = vpop.xlane.xlu1 %596 }
 0x3d6   :  { %v3229_v41 = vpop.eup %2796  ;;  %2804 = vpow2.f32 %v649_v20  ;;  %v631_v43 = vsub.f32 %v3177_v46, %v597_v40 }
 0x3d7   :  { %v3231_v42 = vpop.eup %2798  ;;  %v651_v27 = vmul.f32 1.442695, %v630_v22  ;;  %v676_v31 = vsel %vm576_vm10, %v3229_v41, 0.0 }
 0x3d8   :  { %677 = vadd.xlane.f32.xlu0 %v676_v31  ;;  %v600_v36 = vpop.xlane.xlu0 %599  ;;  %v673_v52 = vsel %vm576_vm10, %v3231_v42, 0.0  ;;  %v653_v56 = vmul.f32 1.442695, %v631_v43 }
 0x3d9   :  { %2806 = vpow2.f32 %v651_v27  ;;  %v632_v37 = vsub.f32 %v3179_v49, %v600_v36  ;;  %674 = vadd.xlane.f32.xlu1 %v673_v52 }
 0x3db   :  { %v3239_v55 = vpop.eup %2800  ;;  %v655_v57 = vmul.f32 1.442695, %v632_v37 }
 0x3dc   :  { %v682_v60 = vsel %vm576_vm10, %v3239_v55, 0.0 }
 0x3dd   :  { %2808 = vpow2.f32 %v655_v57  ;;  %683 = vadd.xlane.f32.xlu0 %v682_v60 }
 0x3de   :  { %2810 = vpow2.f32 %v653_v56 }
 0x3df   :  { %v3243_v46 = vpop.eup %2802  ;;  %v606_v63 = vpop.xlane.xlu0 %605 }
 0x3e0   :  { %v634_v1 = vsub.f32 %v3187_v59, %v606_v63  ;;  %v603_v2 = vpop.xlane.xlu1 %602  ;;  %v679_v49 = vsel %vm576_vm10, %v3243_v46, 0.0  ;;  %v3248_v4 = vpop.eup %2804 }
 0x3e1   :  { %v633_v7 = vsub.f32 %v3189_v62, %v603_v2  ;;  %680 = vadd.xlane.f32.xlu1 %v679_v49  ;;  %v685_v59 = vsel %vm576_vm10, %v3248_v4, 0.0 }
 0x3e2   :  { %v659_v8 = vmul.f32 1.442695, %v634_v1 }
 0x3e3   :  { %v3251_v9 = vpop.eup %2806  ;;  %v657_v11 = vmul.f32 1.442695, %v633_v7  ;;  %v612_v13 = vpop.xlane.xlu0 %611 }
 0x3e4   :  { %2812 = vpow2.f32 %v659_v8  ;;  %v636_v14 = vsub.f32 %v3195_v3, %v612_v13  ;;  %v609_v15 = vpop.xlane.xlu1 %608  ;;  %v688_v17 = vsel %vm576_vm10, %v3251_v9, 0.0 }
 0x3e5   :  { %2814 = vpow2.f32 %v657_v11  ;;  %v635_v19 = vsub.f32 %v3197_v6, %v609_v15  ;;  %686 = vadd.xlane.f32.xlu1 %v685_v59  ;;  %689 = vadd.xlane.f32.xlu0 %v688_v17 }
 0x3e6   :  { %v663_v62 = vmul.f32 1.442695, %v636_v14 }
 0x3e7   :  { %v3259_v21 = vpop.eup %2808  ;;  %v661_v23 = vmul.f32 1.442695, %v635_v19  ;;  %v618_v24 = vpop.xlane.xlu0 %617 }
 0x3e8   :  { %2816 = vpow2.f32 %v663_v62  ;;  %v638_v3 = vsub.f32 %v3203_v10, %v618_v24  ;;  %v615_v25 = vpop.xlane.xlu1 %614  ;;  %v694_v26 = vsel %vm576_vm10, %v3259_v21, 0.0  ;;  %v3264_v28 = vpop.eup %2810 }
 0x3e9   :  { %v637_v29 = vsub.f32 %v3205_v12, %v615_v25  ;;  %695 = vadd.xlane.f32.xlu0 %v694_v26  ;;  %2818 = vpow2.f32 %v661_v23  ;;  %v691_v10 = vsel %vm576_vm10, %v3264_v28, 0.0 }
 0x3ea   :  { %v667_v6 = vmul.f32 1.442695, %v638_v3 }
 0x3eb   :  { %v665_v30 = vmul.f32 1.442695, %v637_v29  ;;  %v624_v32 = vpop.xlane.xlu0 %623 }
 0x3ec   :  { %2820 = vpow2.f32 %v667_v6  ;;  %v640_v33 = vsub.f32 %v3211_v16, %v624_v32  ;;  %v621_v34 = vpop.xlane.xlu1 %620 }
 0x3ed   :  { %v639_v61 = vsub.f32 %v3213_v18, %v621_v34  ;;  %692 = vadd.xlane.f32.xlu0 %v691_v10  ;;  %2822 = vpow2.f32 %v665_v30 }
 0x3ee   :  { %v3271_v35 = vpop.eup %2812  ;;  %v671_v58 = vmul.f32 1.442695, %v640_v33 }
 0x3ef   :  { %v3273_v38 = vpop.eup %2814  ;;  %v669_v12 = vmul.f32 1.442695, %v639_v61  ;;  %v2778_v20 = vpop.permute.xlu0 %2777  ;;  %v700_v39 = vsel %vm576_vm10, %v3271_v35, 0.0 }
 0x3f0   :  { %2824 = vpow2.f32 %v671_v58  ;;  %v2780_v16 = vunpack.i.h.bf16 %v2778_v20  ;;  %v2779_v22 = vunpack.i.l.bf16 %v2778_v20  ;;  %v697_v40 = vsel %vm576_vm10, %v3273_v38, 0.0  ;;  %v2783_v49 = vpop.permute.xlu1 %2782 }
 0x3f1   :  { %698 = vadd.xlane.f32.xlu1 %v697_v40  ;;  %701 = vadd.xlane.f32.xlu0 %v700_v39  ;;  %2826 = vpow2.f32 %v669_v12  ;;  %v2785_v59 = vunpack.i.h.bf16 %v2783_v49  ;;  %v2784_v17 = vunpack.i.l.bf16 %v2783_v49 }
 0x3f2   :  { %v3279_v18 = vpop.eup %2816  ;;  %v2640_v27 = vpack.c.bf16 %v2780_v16, %v2779_v22 }
 0x3f3   :  { %v706_v43 = vsel %vm576_vm10, %v3279_v18, 0.0  ;;  %v3283_v31 = vpop.eup %2818 }
 0x3f4   :  { %2641 = vmatprep.subr.bf16.mxu1 %v2640_v27  ;;  %v703_v37 = vsel %vm576_vm10, %v3283_v31, 0.0 }
 0x3f5   :  { %707 = vadd.xlane.f32.xlu0 %v706_v43 }
 0x3f6   :  { %v3285_v36 = vpop.eup %2820 }
 0x3f7   :  { %v712_v52 = vsel %vm576_vm10, %v3285_v36, 0.0  ;;  %v3291_v56 = vpop.eup %2822 }
 0x3f8   :  { %713 = vadd.xlane.f32.xlu1 %v712_v52  ;;  %v709_v63 = vsel %vm576_vm10, %v3291_v56, 0.0 }
 0x3f9   :  { %704 = vadd.xlane.f32.xlu0 %v703_v37 }
 0x3fa   :  { %v3293_v57 = vpop.eup %2824 }
 0x3fb   :  { %v718_v60 = vsel %vm576_vm10, %v3293_v57, 0.0  ;;  %v3299_v1 = vpop.eup %2826 }
 0x3fc   :  { %719 = vadd.xlane.f32.xlu1 %v718_v60  ;;  %v715_v2 = vsel %vm576_vm10, %v3299_v1, 0.0 }
 0x3fd   :  { %710 = vadd.xlane.f32.xlu0 %v709_v63 }
 0x401   :  { %716 = vadd.xlane.f32.xlu0 %v715_v2 }
 0x40d   :  { %2792 = vrot.lane.b32.xlu1 %v3071_v5, %s2948_s12 }
 0x417   :  { %2787 = vrot.lane.b32.xlu0 %v3061_v0, %s2948_s12  ;;  %v2644_v0 = vpack.c.bf16 %v2785_v59, %v2784_v17 }
 0x465   :  { %v678_v7 = vpop.xlane.xlu0 %677 }
 0x466   :  { %2828 = vrcp.f32 %v678_v7  ;;  %v675_v8 = vpop.xlane.xlu1 %674 }
 0x467   :  { %2830 = vrcp.f32 %v675_v8 }
 0x46a   :  { %v684_v11 = vpop.xlane.xlu0 %683 }
 0x46b   :  { %2832 = vrcp.f32 %v684_v11 }
 0x46e   :  { %v681_v13 = vpop.xlane.xlu1 %680 }
 0x46f   :  { %2834 = vrcp.f32 %v681_v13 }
 0x470   :  { %v2829_v14 = vpop.eup %2828 }
 0x471   :  { %v2831_v15 = vpop.eup %2830  ;;  %v738_v23 = vmul.f32 %v2829_v14, %v3229_v41 }
 0x472   :  { %v687_v19 = vpop.xlane.xlu1 %686  ;;  %v690_v62 = vpop.xlane.xlu0 %689  ;;  %v737_v5 = vmul.f32 %v2831_v15, %v3231_v42 }
 0x473   :  { %2836 = vrcp.f32 %v687_v19 }
 0x474   :  { %2838 = vrcp.f32 %v690_v62  ;;  %2417 = vmatprep.mubr.msk.f32.mxu1 %vm576_vm10, %v737_v5 }
 0x475   :  { %2418 = vmatmul.mubr.msk.f32.vlgmr.msra.gmra.mrb[8].mxu1 %vm576_vm10, %v738_v23  ;;  %v2833_v3 = vpop.eup %2832 }
 0x476   :  { %2643 = vmatpush3.bf16.msra.mxu1 %v2640_v27  ;;  %v696_v24 = vpop.xlane.xlu0 %695  ;;  %v740_v41 = vmul.f32 %v2833_v3, %v3239_v55 }
 0x477   :  { %2645 = vmatprep.subr.bf16.mxu1 %v2644_v0  ;;  %2840 = vrcp.f32 %v696_v24 }
 0x479   :  { %v2835_v25 = vpop.eup %2834 }
 0x47a   :  { %2647 = vmatpush3.bf16.msra.mxu1 %v2644_v0  ;;  %v693_v26 = vpop.xlane.xlu0 %692  ;;  %v739_v29 = vmul.f32 %v2835_v25, %v3243_v46  ;;  %v1102_v25 = vld [vmem:[#allocation2 + $0x90] sm:$0xff] }
 0x47b   :  { %2842 = vrcp.f32 %v693_v26  ;;  %v1103_v26 = vld [vmem:[#allocation2 + $0x98] sm:$0xff] }
 0x47c   :  { %2420 = vmatprep.mubr.msk.f32.mxu1 %vm576_vm10, %v739_v29  ;;  %v2660_v29 = vpack.c.bf16 %v1103_v26, %v1102_v25 }
 0x47d   :  { %v2837_v42 = vpop.eup %2836  ;;  %2421 = vmatmul.mubr.msk.f32.gmra.mrb[10].mxu1 %vm576_vm10, %v740_v41 }
 0x47e   :  { %v2839_v6 = vpop.eup %2838  ;;  %v699_v30 = vpop.xlane.xlu1 %698  ;;  %v741_v33 = vmul.f32 %v2837_v42, %v3248_v4 }
 0x47f   :  { %v702_v32 = vpop.xlane.xlu0 %701  ;;  %2844 = vrcp.f32 %v699_v30  ;;  %v742_v34 = vmul.f32 %v2839_v6, %v3251_v9 }
 0x480   :  { %2423 = vmatprep.mubr.msk.f32.mxu1 %vm576_vm10, %v741_v33  ;;  %2846 = vrcp.f32 %v702_v32 }
 0x481   :  { %2424 = vmatmul.mubr.msk.f32.gmra.mrb[12].mxu1 %vm576_vm10, %v742_v34  ;;  %v2841_v10 = vpop.eup %2840 }
 0x482   :  { %v744_v20 = vmul.f32 %v2841_v10, %v3259_v21 }
 0x483   :  { %v708_v46 = vpop.xlane.xlu0 %707 }
 0x485   :  { %v2843_v55 = vpop.eup %2842  ;;  %v714_v61 = vpop.xlane.xlu1 %713 }
 0x486   :  { %v743_v12 = vmul.f32 %v2843_v55, %v3264_v28 }
 0x487   :  { %v705_v58 = vpop.xlane.xlu0 %704 }
 0x488   :  { %2426 = vmatprep.mubr.msk.f32.mxu1 %vm576_vm10, %v743_v12  ;;  %2848 = vrcp.f32 %v705_v58 }
 0x489   :  { %v2845_v39 = vpop.eup %2844  ;;  %2427 = vmatmul.mubr.msk.f32.gmra.mrb[14].mxu1 %vm576_vm10, %v744_v20  ;;  %v720_v4 = vpop.xlane.xlu1 %719  ;;  %2850 = vrcp.f32 %v708_v46 }
 0x48a   :  { %v745_v16 = vmul.f32 %v2845_v39, %v3273_v38  ;;  %v2847_v38 = vpop.eup %2846 }
 0x48b   :  { %v711_v9 = vpop.xlane.xlu0 %710  ;;  %v746_v2 = vmul.f32 %v2847_v38, %v3271_v35 }
 0x48c   :  { %2445 = vmatprep.mubr.msk.f32.mxu1 %vm576_vm10, %v745_v16  ;;  %2852 = vrcp.f32 %v711_v9 }
 0x48d   :  { %v2793_v40 = vpop.permute.xlu1 %2792  ;;  %2854 = vrcp.f32 %v714_v61 }
 0x48e   :  { %v2795_v43 = vunpack.i.h.bf16 %v2793_v40  ;;  %v2794_v28 = vunpack.i.l.bf16 %v2793_v40 }
 0x48f   :  { %v717_v22 = vpop.xlane.xlu0 %716 }
 0x490   :  { %v2652_v60 = vpack.c.bf16 %v2795_v43, %v2794_v28  ;;  %2856 = vrcp.f32 %v717_v22 }
 0x491   :  { %2858 = vrcp.f32 %v720_v4 }
 0x492   :  { %v2849_v63 = vpop.eup %2848 }
 0x493   :  { %v2788_v27 = vpop.permute.xlu0 %2787  ;;  %v2851_v49 = vpop.eup %2850  ;;  %v747_v7 = vmul.f32 %v2849_v63, %v3283_v31 }
 0x494   :  { %v2790_v52 = vunpack.i.h.bf16 %v2788_v27  ;;  %v2789_v21 = vunpack.i.l.bf16 %v2788_v27  ;;  %v748_v11 = vmul.f32 %v2851_v49, %v3279_v18  ;;  %v1100_v18 = vld [vmem:[#allocation2 + $0x80] sm:$0xff] }
 0x496   :  { %v2648_v37 = vpack.c.bf16 %v2790_v52, %v2789_v21  ;;  %v2853_v8 = vpop.eup %2852  ;;  %v2131_v52 = vld [vmem:[#allocation2 + $0x180] ss:$0 sm:$0xff] }
 0x497   :  { %v2855_v13 = vpop.eup %2854  ;;  %v749_v14 = vmul.f32 %v2853_v8, %v3291_v56  ;;  %v1101_v56 = vld [vmem:[#allocation2 + $0x88] sm:$0xff] }
 0x498   :  { %2649 = vmatprep.subr.bf16.mxu1 %v2648_v37  ;;  %v750_v35 = vmul.f32 %v2855_v13, %v3285_v36  ;;  %v2656_v19 = vpack.c.bf16 %v1101_v56, %v1100_v18 }
 0x499   :  { %2651 = vmatpush3.bf16.msra.mxu1 %v2648_v37 }
 0x49a   :  { %2653 = vmatprep.subr.bf16.mxu1 %v2652_v60  ;;  %v2857_v15 = vpop.eup %2856  ;;  %2657 = vmatprep.subr.bf16.mxu0 %v2656_v19 }
 0x49b   :  { %v2859_v59 = vpop.eup %2858  ;;  %v751_v31 = vmul.f32 %v2857_v15, %v3299_v1  ;;  %2659 = vmatpush3.bf16.msra.mxu0 %v2656_v19 }
 0x49c   :  { %v752_v17 = vmul.f32 %v2859_v59, %v3293_v57  ;;  %2661 = vmatprep.subr.bf16.mxu0 %v2660_v29 }
 0x49d   :  { %2655 = vmatpush3.bf16.msra.mxu1 %v2652_v60 }
 0x49f   :  { %2663 = vmatpush3.bf16.msra.mxu0 %v2660_v29 }
 0x4a0   :  { %2446 = vmatmul.mubr.msk.f32.vlgmr.msra.gmra.mrb[16].mxu1 %vm576_vm10, %v746_v2 }
 0x4a1   :  { %2448 = vmatprep.mubr.msk.f32.mxu1 %vm576_vm10, %v747_v7 }
 0x4a4   :  { %2449 = vmatmul.mubr.msk.f32.gmra.mrb[18].mxu1 %vm576_vm10, %v748_v11 }
 0x4a5   :  { %2451 = vmatprep.mubr.msk.f32.mxu1 %vm576_vm10, %v749_v14 }
 0x4a8   :  { %2452 = vmatmul.mubr.msk.f32.gmra.mrb[20].mxu1 %vm576_vm10, %v750_v35 }
 0x4a9   :  { %2454 = vmatprep.mubr.msk.f32.mxu1 %vm576_vm10, %v751_v31 }
 0x4ac   :  { %2455 = vmatmul.mubr.msk.f32.gmra.mrb[22].mxu1 %vm576_vm10, %v752_v17 }
 0x548   :  { %v2419_v62 = vpop.f32.mrb[8].mxu1 }
 0x549   :  { %v867_v5 = vpop.f32.mrb[9].mxu1 }
 0x550   :  { %v2422_v23 = vpop.f32.mrb[10].mxu1 }
 0x551   :  { %v877_v36 = vpop.f32.mrb[11].mxu1 }
 0x554   :  { %v2425_v0 = vpop.f32.mrb[12].mxu1 }
 0x555   :  { %v887_v24 = vpop.f32.mrb[13].mxu1 }
 0x55c   :  { %v2428_v1 = vpop.f32.mrb[14].mxu1 }
 0x55d   :  { %v897_v3 = vpop.f32.mrb[15].mxu1 }
 0x573   :  { %v2447_v57 = vpop.f32.mrb[16].mxu1 }
 0x574   :  { %1069 = vrot.lane.b32.xlu1 %v2447_v57, %s2949_s13  ;;  %v1020_v41 = vpop.f32.mrb[17].mxu1 }
 0x577   :  { %v2450_v42 = vpop.f32.mrb[18].mxu1 }
 0x578   :  { %1067 = vrot.lane.b32.xlu1 %v1020_v41, %s2949_s13  ;;  %v1030_v6 = vpop.f32.mrb[19].mxu1 }
 0x57b   :  { %v2453_v30 = vpop.f32.mrb[20].mxu1 }
 0x57c   :  { %1071 = vrot.lane.b32.xlu1 %v1030_v6, %s2949_s13  ;;  %v1040_v32 = vpop.f32.mrb[21].mxu1 }
 0x57d   :  { %1075 = vrot.lane.b32.xlu0 %v1040_v32, %s2949_s13 }
 0x57f   :  { %v2456_v33 = vpop.f32.mrb[22].mxu1 }
 0x580   :  { %1073 = vrot.lane.b32.xlu1 %v2450_v42, %s2949_s13  ;;  %v1050_v34 = vpop.f32.mrb[23].mxu1 }
 0x581   :  { %1079 = vrot.lane.b32.xlu0 %v1050_v34, %s2949_s13 }
 0x584   :  { %1077 = vrot.lane.b32.xlu1 %v2453_v30, %s2949_s13 }
 0x588   :  { %1081 = vrot.lane.b32.xlu1 %v2456_v33, %s2949_s13 }
 0x5e6   :  { %v1070_v46 = vpop.permute.xlu1 %1069 }
 0x5e7   :  { %v1092_v61 = vsel %vm269_vm8, %v2419_v62, %v1070_v46 }
 0x5ea   :  { %v1068_v10 = vpop.permute.xlu1 %1067 }
 0x5eb   :  { %v1091_v55 = vsel %vm269_vm8, %v867_v5, %v1068_v10 }
 0x5ec   :  { %2465 = vmatprep.mubr.msk.f32.mxu0 %vm1108_vm11, %v1091_v55 }
 0x5ed   :  { %2466 = vmatmul.mubr.msk.f32.vlgmr.msra.gmra.mrb[16].mxu0 %vm1108_vm11, %v1092_v61 }
 0x5ee   :  { %v1072_v58 = vpop.permute.xlu1 %1071 }
 0x5ef   :  { %v1093_v12 = vsel %vm269_vm8, %v877_v36, %v1072_v58  ;;  %v1076_v20 = vpop.permute.xlu0 %1075 }
 0x5f0   :  { %2468 = vmatprep.mubr.msk.f32.mxu0 %vm1108_vm11, %v1093_v12  ;;  %v1095_v9 = vsel %vm269_vm8, %v887_v24, %v1076_v20 }
 0x5f2   :  { %v1074_v39 = vpop.permute.xlu1 %1073 }
 0x5f3   :  { %v1094_v4 = vsel %vm269_vm8, %v2422_v23, %v1074_v39  ;;  %v1080_v16 = vpop.permute.xlu0 %1079 }
 0x5f4   :  { %2469 = vmatmul.mubr.msk.f32.gmra.mrb[18].mxu0 %vm1108_vm11, %v1094_v4  ;;  %v1097_v27 = vsel %vm269_vm8, %v897_v3, %v1080_v16 }
 0x5f5   :  { %2471 = vmatprep.mubr.msk.f32.mxu0 %vm1108_vm11, %v1095_v9 }
 0x5f6   :  { %v1078_v22 = vpop.permute.xlu1 %1077 }
 0x5f7   :  { %v1096_v40 = vsel %vm269_vm8, %v2425_v0, %v1078_v22 }
 0x5f8   :  { %2472 = vmatmul.mubr.msk.f32.gmra.mrb[20].mxu0 %vm1108_vm11, %v1096_v40 }
 0x5f9   :  { %2474 = vmatprep.mubr.msk.f32.mxu0 %vm1108_vm11, %v1097_v27 }
 0x5fa   :  { %v1082_v43 = vpop.permute.xlu1 %1081 }
 0x5fb   :  { %v1098_v28 = vsel %vm269_vm8, %v2428_v1, %v1082_v43 }
 0x5fc   :  { %2475 = vmatmul.mubr.msk.f32.gmra.mrb[22].mxu0 %vm1108_vm11, %v1098_v28 }
 0x6c0   :  { %v2467_v21 = vpop.f32.mrb[16].mxu0 }
 0x6c1   :  { %v1205_v37 = vadd.f32 %v2467_v21, %v2131_v52  ;;  %v1199_v60 = vpop.f32.mrb[17].mxu0 }
 0x6c2   :  { %v1200_v38 = vadd.f32 %v2131_v52, %v1199_v60 }
 0x6c3   :  { %v1241_v63 = vadd.f32 %v3005_v44, %v1205_v37 }
 0x6c4   :  { %v1240_v2 = vadd.f32 %v1200_v38, %v3008_v45 }
 0x6c5   :  { %v1251_v49 = vsel %vm1108_vm11, %v1241_v63, 0.0 }
 0x6c6   :  { %1252 = vadd.xlane.f32.xlu1 %v1251_v49  ;;  %v1248_v7 = vsel %vm1108_vm11, %v1240_v2, 0.0 }
 0x6c7   :  { %v2470_v8 = vpop.f32.mrb[18].mxu0  ;;  %1249 = vadd.xlane.f32.xlu0 %v1248_v7 }
 0x6c8   :  { %v1215_v11 = vadd.f32 %v2470_v8, %v2131_v52  ;;  %v1209_v13 = vpop.f32.mrb[19].mxu0  ;;  %v1378_v8 = vld [vmem:[#allocation2 + $0xa0] sm:$0xff] }
 0x6c9   :  { %v1210_v14 = vadd.f32 %v2131_v52, %v1209_v13 }
 0x6ca   :  { %v1243_v15 = vadd.f32 %v3015_v47, %v1215_v11  ;;  %v1379_v11 = vld [vmem:[#allocation2 + $0xa8] sm:$0xff] }
 0x6cb   :  { %v2473_v35 = vpop.f32.mrb[20].mxu0  ;;  %v1242_v59 = vadd.f32 %v1210_v14, %v3018_v48  ;;  %v2664_v13 = vpack.c.bf16 %v1379_v11, %v1378_v8  ;;  %v1380_v14 = vld [vmem:[#allocation2 + $0xb0] sm:$0xff] }
 0x6cc   :  { %v1225_v31 = vadd.f32 %v2473_v35, %v2131_v52  ;;  %v1219_v17 = vpop.f32.mrb[21].mxu0  ;;  %v1257_v47 = vsel %vm1108_vm11, %v1243_v15, 0.0 }
 0x6cd   :  { %v1220_v44 = vadd.f32 %v2131_v52, %v1219_v17  ;;  %v1254_v45 = vsel %vm1108_vm11, %v1242_v59, 0.0  ;;  %2665 = vmatprep.subr.bf16.mxu1 %v2664_v13  ;;  %v1526_v17 = vld [vmem:[#allocation2 + $0xd0] sm:$0xff] }
 0x6ce   :  { %1255 = vadd.xlane.f32.xlu0 %v1254_v45  ;;  %v1245_v18 = vadd.f32 %v3025_v50, %v1225_v31  ;;  %2667 = vmatpush3.bf16.msra.mxu1 %v2664_v13  ;;  %v1525_v31 = vld [vmem:[#allocation2 + $0xc8] sm:$0xff]  ;;  %v1527_v45 = vld [vmem:[#allocation2 + $0xd8] sm:$0xff] }
 0x6cf   :  { %v2476_v56 = vpop.f32.mrb[22].mxu0  ;;  %v1244_v19 = vadd.f32 %v1220_v44, %v3028_v51 }
 0x6d0   :  { %v1235_v62 = vadd.f32 %v2476_v56, %v2131_v52  ;;  %v1229_v5 = vpop.f32.mrb[23].mxu0  ;;  %v1263_v24 = vsel %vm1108_vm11, %v1245_v18, 0.0  ;;  %v1528_v56 = vld [vmem:[#allocation2 + $0xe0] sm:$0xff] }
 0x6d1   :  { %v1230_v23 = vadd.f32 %v2131_v52, %v1229_v5  ;;  %v1260_v36 = vsel %vm1108_vm11, %v1244_v19, 0.0 }
 0x6d2   :  { %1261 = vadd.xlane.f32.xlu1 %v1260_v36  ;;  %1258 = vadd.xlane.f32.xlu0 %v1257_v47  ;;  %v1247_v48 = vadd.f32 %v3035_v53, %v1235_v62 }
 0x6d3   :  { %v1246_v0 = vadd.f32 %v1230_v23, %v3038_v54 }
 0x6d4   :  { %v1269_v51 = vsel %vm1108_vm11, %v1247_v48, 0.0 }
 0x6d5   :  { %v1266_v50 = vsel %vm1108_vm11, %v1246_v0, 0.0 }
 0x6d6   :  { %1264 = vadd.xlane.f32.xlu0 %v1263_v24  ;;  %1267 = vadd.xlane.f32.xlu1 %v1266_v50 }
 0x6da   :  { %1270 = vadd.xlane.f32.xlu0 %v1269_v51 }
 0x753   :  { %v1253_v1 = vpop.xlane.xlu1 %1252 }
 0x754   :  { %v1274_v3 = vmul.f32 0.03125, %v1253_v1  ;;  %v1250_v25 = vpop.xlane.xlu0 %1249 }
 0x755   :  { %v1273_v26 = vmul.f32 0.03125, %v1250_v25 }
 0x756   :  { %v3371_v29 = vsub.f32 %v1241_v63, %v1274_v3 }
 0x757   :  { %v3373_v57 = vsub.f32 %v1240_v2, %v1273_v26 }
 0x758   :  { %v1290_v53 = vmul.f32 %v3371_v29, %v3371_v29 }
 0x759   :  { %v1289_v54 = vmul.f32 %v3373_v57, %v3373_v57 }
 0x75a   :  { %v1300_v41 = vsel %vm1108_vm11, %v1290_v53, 0.0 }
 0x75b   :  { %1301 = vadd.xlane.f32.xlu0 %v1300_v41  ;;  %v1256_v42 = vpop.xlane.xlu0 %1255  ;;  %v1297_v6 = vsel %vm1108_vm11, %v1289_v54, 0.0  ;;  %v2140_v54 = vld [vmem:[#allocation2 + $0x181] ss:$0 sm:$0xff] }
 0x75c   :  { %v1275_v30 = vmul.f32 0.03125, %v1256_v42  ;;  %1298 = vadd.xlane.f32.xlu1 %v1297_v6 }
 0x75e   :  { %v3381_v32 = vsub.f32 %v1242_v59, %v1275_v30  ;;  %v1524_v59 = vld [vmem:[#allocation2 + $0xc0] sm:$0xff] }
 0x75f   :  { %v1262_v33 = vpop.xlane.xlu1 %1261  ;;  %v1259_v34 = vpop.xlane.xlu0 %1258  ;;  %v2672_v44 = vpack.c.bf16 %v1525_v31, %v1524_v59 }
 0x760   :  { %v1277_v46 = vmul.f32 0.03125, %v1262_v33  ;;  %v1276_v10 = vmul.f32 0.03125, %v1259_v34  ;;  %v1291_v55 = vmul.f32 %v3381_v32, %v3381_v32 }
 0x761   :  { %2673 = vmatprep.subr.bf16.mxu0 %v2672_v44 }
 0x762   :  { %v3385_v61 = vsub.f32 %v1244_v19, %v1277_v46  ;;  %v3387_v58 = vsub.f32 %v1243_v15, %v1276_v10  ;;  %v1303_v12 = vsel %vm1108_vm11, %v1291_v55, 0.0  ;;  %v1381_v15 = vld [vmem:[#allocation2 + $0xb8] sm:$0xff]  ;;  %v1529_v19 = vld [vmem:[#allocation2 + $0xe8] sm:$0xff]  ;;  %2675 = vmatpush3.bf16.msra.mxu0 %v2672_v44 }
 0x763   :  { %v1268_v20 = vpop.xlane.xlu1 %1267  ;;  %1304 = vadd.xlane.f32.xlu1 %v1303_v12  ;;  %v1265_v39 = vpop.xlane.xlu0 %1264  ;;  %v2668_v35 = vpack.c.bf16 %v1381_v15, %v1380_v14  ;;  %v2680_v62 = vpack.c.bf16 %v1529_v19, %v1528_v56  ;;  %v2141_v12 = vld [vmem:[#allocation2 + $0x182] ss:$0 sm:$0xff] }
 0x764   :  { %v1279_v4 = vmul.f32 0.03125, %v1268_v20  ;;  %v1278_v9 = vmul.f32 0.03125, %v1265_v39  ;;  %v1293_v16 = vmul.f32 %v3385_v61, %v3385_v61  ;;  %v1292_v22 = vmul.f32 %v3387_v58, %v3387_v58 }
 0x765   :  { %2669 = vmatprep.subr.bf16.mxu1 %v2668_v35 }
 0x766   :  { %v3394_v40 = vsub.f32 %v1246_v0, %v1279_v4  ;;  %v3396_v27 = vsub.f32 %v1245_v18, %v1278_v9  ;;  %v1309_v43 = vsel %vm1108_vm11, %v1293_v16, 0.0  ;;  %v1306_v28 = vsel %vm1108_vm11, %v1292_v22, 0.0  ;;  %2671 = vmatpush3.bf16.msra.mxu1 %v2668_v35 }
 0x767   :  { %1310 = vadd.xlane.f32.xlu1 %v1309_v43  ;;  %1307 = vadd.xlane.f32.xlu0 %v1306_v28  ;;  %v1271_v52 = vpop.xlane.xlu0 %1270  ;;  %v2676_v18 = vpack.c.bf16 %v1527_v45, %v1526_v17  ;;  %v1530_v45 = vld [vmem:[#allocation2 + $0xf0] sm:$0xff] }
 0x768   :  { %v1280_v21 = vmul.f32 0.03125, %v1271_v52  ;;  %v1295_v37 = vmul.f32 %v3394_v40, %v3394_v40  ;;  %v1294_v60 = vmul.f32 %v3396_v27, %v3396_v27 }
 0x769   :  { %2677 = vmatprep.subr.bf16.mxu0 %v2676_v18 }
 0x76a   :  { %v3404_v38 = vsub.f32 %v1247_v48, %v1280_v21  ;;  %v1315_v63 = vsel %vm1108_vm11, %v1295_v37, 0.0  ;;  %v1312_v2 = vsel %vm1108_vm11, %v1294_v60, 0.0  ;;  %2679 = vmatpush3.bf16.msra.mxu0 %v2676_v18  ;;  %v1531_v18 = vld [vmem:[#allocation2 + $0xf8] sm:$0xff] }
 0x76b   :  { %1316 = vadd.xlane.f32.xlu1 %v1315_v63  ;;  %1313 = vadd.xlane.f32.xlu0 %v1312_v2  ;;  %v2684_v56 = vpack.c.bf16 %v1531_v18, %v1530_v45 }
 0x76c   :  { %v1296_v49 = vmul.f32 %v3404_v38, %v3404_v38  ;;  %2681 = vmatprep.subr.bf16.mxu0 %v2680_v62 }
 0x76e   :  { %v1318_v7 = vsel %vm1108_vm11, %v1296_v49, 0.0  ;;  %2683 = vmatpush3.bf16.msra.mxu0 %v2680_v62 }
 0x76f   :  { %1319 = vadd.xlane.f32.xlu0 %v1318_v7  ;;  %2685 = vmatprep.subr.bf16.mxu0 %v2684_v56 }
 0x772   :  { %2687 = vmatpush3.bf16.msra.mxu0 %v2684_v56 }
 0x7e8   :  { %v1302_v5 = vpop.xlane.xlu0 %1301 }
 0x7e9   :  { %v1322_v23 = vmul.f32 0.03125, %v1302_v5  ;;  %v1299_v36 = vpop.xlane.xlu1 %1298 }
 0x7ea   :  { %v1321_v47 = vmul.f32 0.03125, %v1299_v36 }
 0x7eb   :  { %v1330_v48 = vadd.f32 1e-05, %v1322_v23 }
 0x7ec   :  { %v1329_v0 = vadd.f32 1e-05, %v1321_v47 }
 0x7ed   :  { %2860 = vrsqrt.f32 %v1330_v48 }
 0x7ee   :  { %2862 = vrsqrt.f32 %v1329_v0 }
 0x7f0   :  { %v1305_v24 = vpop.xlane.xlu1 %1304 }
 0x7f1   :  { %v1323_v50 = vmul.f32 0.03125, %v1305_v24 }
 0x7f3   :  { %v1331_v51 = vadd.f32 1e-05, %v1323_v50 }
 0x7f4   :  { %v1311_v1 = vpop.xlane.xlu1 %1310  ;;  %v1308_v3 = vpop.xlane.xlu0 %1307 }
 0x7f5   :  { %2864 = vrsqrt.f32 %v1331_v51  ;;  %v1325_v25 = vmul.f32 0.03125, %v1311_v1  ;;  %v1324_v26 = vmul.f32 0.03125, %v1308_v3 }
 0x7f7   :  { %v2861_v53 = vpop.eup %2860  ;;  %v1333_v41 = vadd.f32 1e-05, %v1325_v25  ;;  %v1332_v42 = vadd.f32 1e-05, %v1324_v26 }
 0x7f8   :  { %v2863_v6 = vpop.eup %2862  ;;  %v1346_v30 = vmul.f32 %v2861_v53, %v3371_v29  ;;  %v1317_v33 = vpop.xlane.xlu1 %1316 }
 0x7f9   :  { %v1314_v34 = vpop.xlane.xlu0 %1313  ;;  %2866 = vrsqrt.f32 %v1333_v41  ;;  %v1327_v46 = vmul.f32 0.03125, %v1317_v33  ;;  %v1345_v55 = vmul.f32 %v2863_v6, %v3373_v57 }
 0x7fa   :  { %v1326_v10 = vmul.f32 0.03125, %v1314_v34  ;;  %v1358_v20 = vmul.f32 %v2140_v54, %v1346_v30  ;;  %2868 = vrsqrt.f32 %v1332_v42 }
 0x7fb   :  { %v1335_v39 = vadd.f32 1e-05, %v1327_v46  ;;  %v1357_v9 = vmul.f32 %v2140_v54, %v1345_v55 }
 0x7fc   :  { %v1334_v4 = vadd.f32 1e-05, %v1326_v10  ;;  %v3415_v28 = vadd.f32 %v2141_v12, %v1358_v20  ;;  %v2151_v10 = vld [vmem:[#allocation2 + $0x184] ss:$0 sm:$0xff] }
 0x7fd   :  { %v1320_v16 = vpop.xlane.xlu0 %1319  ;;  %2870 = vrsqrt.f32 %v1335_v39  ;;  %v3413_v43 = vadd.f32 %v2141_v12, %v1357_v9 }
 0x7fe   :  { %v1328_v22 = vmul.f32 0.03125, %v1320_v16  ;;  %2872 = vrsqrt.f32 %v1334_v4 }
 0x7ff   :  { %v2865_v29 = vpop.eup %2864  ;;  %2485 = vmatprep.mubr.msk.f32.mxu1 %vm1108_vm11, %v3413_v43 }
 0x800   :  { %v1336_v52 = vadd.f32 1e-05, %v1328_v22  ;;  %2486 = vmatmul.mubr.msk.f32.vlgmr.msra.gmra.mrb[24].mxu1 %vm1108_vm11, %v3415_v28  ;;  %v1347_v57 = vmul.f32 %v2865_v29, %v3381_v32 }
 0x802   :  { %2874 = vrsqrt.f32 %v1336_v52  ;;  %v1359_v21 = vmul.f32 %v2140_v54, %v1347_v57 }
 0x803   :  { %v2867_v37 = vpop.eup %2866 }
 0x804   :  { %v2869_v60 = vpop.eup %2868  ;;  %v3422_v63 = vadd.f32 %v2141_v12, %v1359_v21  ;;  %v1349_v2 = vmul.f32 %v2867_v37, %v3385_v61 }
 0x805   :  { %v1348_v49 = vmul.f32 %v2869_v60, %v3387_v58 }
 0x806   :  { %2488 = vmatprep.mubr.msk.f32.mxu1 %vm1108_vm11, %v3422_v63  ;;  %v1361_v7 = vmul.f32 %v2140_v54, %v1349_v2 }
 0x807   :  { %v2871_v8 = vpop.eup %2870  ;;  %v1360_v11 = vmul.f32 %v2140_v54, %v1348_v49 }
 0x808   :  { %v2873_v13 = vpop.eup %2872  ;;  %v3428_v14 = vadd.f32 %v2141_v12, %v1361_v7  ;;  %v1351_v32 = vmul.f32 %v2871_v8, %v3394_v40 }
 0x809   :  { %v3431_v15 = vadd.f32 %v2141_v12, %v1360_v11  ;;  %v1350_v35 = vmul.f32 %v2873_v13, %v3396_v27 }
 0x80a   :  { %v1363_v59 = vmul.f32 %v2140_v54, %v1351_v32 }
 0x80b   :  { %2489 = vmatmul.mubr.msk.f32.gmra.mrb[26].mxu1 %vm1108_vm11, %v3431_v15  ;;  %v1362_v61 = vmul.f32 %v2140_v54, %v1350_v35 }
 0x80c   :  { %v2875_v31 = vpop.eup %2874  ;;  %2491 = vmatprep.mubr.msk.f32.mxu1 %vm1108_vm11, %v3428_v14  ;;  %v3438_v58 = vadd.f32 %v2141_v12, %v1363_v59 }
 0x80d   :  { %v1352_v17 = vmul.f32 %v2875_v31, %v3404_v38  ;;  %v3441_v44 = vadd.f32 %v2141_v12, %v1362_v61  ;;  %v2142_v38 = vld [vmem:[#allocation2 + $0x183] ss:$0 sm:$0xff] }
 0x80f   :  { %v1364_v40 = vmul.f32 %v2140_v54, %v1352_v17  ;;  %2492 = vmatmul.mubr.msk.f32.gmra.mrb[28].mxu1 %vm1108_vm11, %v3441_v44 }
 0x810   :  { %2494 = vmatprep.mubr.msk.f32.mxu1 %vm1108_vm11, %v3438_v58 }
 0x811   :  { %v3447_v27 = vadd.f32 %v2141_v12, %v1364_v40 }
 0x813   :  { %2495 = vmatmul.mubr.msk.f32.gmra.mrb[30].mxu1 %vm1108_vm11, %v3447_v27 }
 0x8d3   :  { %v2487_v19 = vpop.f32.mrb[24].mxu1 }
 0x8d4   :  { %v1482_v62 = vadd.f32 %v2487_v19, %v2142_v38  ;;  %v1476_v5 = vpop.f32.mrb[25].mxu1 }
 0x8d5   :  { %v1477_v23 = vadd.f32 %v2142_v38, %v1476_v5 }
 0x8d6   :  { %v1516_v47 = vmax.f32 %v1482_v62, 0.0 }
 0x8d7   :  { %v1515_v36 = vmax.f32 %v1477_v23, 0.0 }
 0x8d9   :  { %2513 = vmatprep.mubr.msk.f32.mxu0 %vm576_vm10, %v1515_v36 }
 0x8da   :  { %2514 = vmatmul.mubr.msk.f32.vlgmr.msra.gmra.mrb[24].mxu0 %vm576_vm10, %v1516_v47 }
 0x8de   :  { %v2490_v48 = vpop.f32.mrb[26].mxu1 }
 0x8df   :  { %v1492_v0 = vadd.f32 %v2490_v48, %v2142_v38  ;;  %v1486_v24 = vpop.f32.mrb[27].mxu1 }
 0x8e0   :  { %v1487_v50 = vadd.f32 %v2142_v38, %v1486_v24 }
 0x8e1   :  { %v1518_v3 = vmax.f32 %v1492_v0, 0.0 }
 0x8e2   :  { %v1517_v51 = vmax.f32 %v1487_v50, 0.0  ;;  %v2493_v1 = vpop.f32.mrb[28].mxu1 }
 0x8e3   :  { %v1502_v25 = vadd.f32 %v2493_v1, %v2142_v38  ;;  %v1496_v26 = vpop.f32.mrb[29].mxu1 }
 0x8e4   :  { %v1497_v53 = vadd.f32 %v2142_v38, %v1496_v26  ;;  %2516 = vmatprep.mubr.msk.f32.mxu0 %vm576_vm10, %v1517_v51 }
 0x8e5   :  { %2517 = vmatmul.mubr.msk.f32.gmra.mrb[26].mxu0 %vm576_vm10, %v1518_v3  ;;  %v1520_v42 = vmax.f32 %v1502_v25, 0.0 }
 0x8e6   :  { %v1519_v54 = vmax.f32 %v1497_v53, 0.0  ;;  %v2496_v41 = vpop.f32.mrb[30].mxu1 }
 0x8e7   :  { %v1512_v6 = vadd.f32 %v2496_v41, %v2142_v38  ;;  %v1506_v30 = vpop.f32.mrb[31].mxu1 }
 0x8e8   :  { %v1507_v33 = vadd.f32 %v2142_v38, %v1506_v30  ;;  %2519 = vmatprep.mubr.msk.f32.mxu0 %vm576_vm10, %v1519_v54 }
 0x8e9   :  { %2520 = vmatmul.mubr.msk.f32.gmra.mrb[28].mxu0 %vm576_vm10, %v1520_v42  ;;  %v1522_v46 = vmax.f32 %v1512_v6, 0.0 }
 0x8ea   :  { %v1521_v34 = vmax.f32 %v1507_v33, 0.0 }
 0x8ec   :  { %2522 = vmatprep.mubr.msk.f32.mxu0 %vm576_vm10, %v1521_v34 }
 0x8ed   :  { %2523 = vmatmul.mubr.msk.f32.gmra.mrb[30].mxu0 %vm576_vm10, %v1522_v46 }
 0x9ad   :  { %v2515_v55 = vpop.f32.mrb[24].mxu0 }
 0x9ae   :  { %v1632_v12 = vadd.f32 %v2515_v55, %v2151_v10  ;;  %v1626_v20 = vpop.f32.mrb[25].mxu0 }
 0x9af   :  { %v1627_v39 = vadd.f32 %v2151_v10, %v1626_v20 }
 0x9b0   :  { %v1668_v4 = vadd.f32 %v1632_v12, %v3415_v28 }
 0x9b1   :  { %v1667_v9 = vadd.f32 %v1627_v39, %v3413_v43 }
 0x9b2   :  { %v1678_v16 = vsel %vm1108_vm11, %v1668_v4, 0.0 }
 0x9b3   :  { %1679 = vadd.xlane.f32.xlu0 %v1678_v16  ;;  %v1675_v22 = vsel %vm1108_vm11, %v1667_v9, 0.0 }
 0x9b4   :  { %1676 = vadd.xlane.f32.xlu1 %v1675_v22 }
 0x9b8   :  { %v2518_v29 = vpop.f32.mrb[26].mxu0 }
 0x9b9   :  { %v1642_v52 = vadd.f32 %v2518_v29, %v2151_v10  ;;  %v1636_v57 = vpop.f32.mrb[27].mxu0  ;;  %v1966_v29 = vld [vmem:[#allocation2 + $0x100] sm:$0xff] }
 0x9ba   :  { %v1637_v21 = vadd.f32 %v2151_v10, %v1636_v57  ;;  %v1968_v57 = vld [vmem:[#allocation2 + $0x110] sm:$0xff] }
 0x9bb   :  { %v1670_v37 = vadd.f32 %v1642_v52, %v3431_v15  ;;  %v1967_v52 = vld [vmem:[#allocation2 + $0x108] sm:$0xff] }
 0x9bc   :  { %v1669_v60 = vadd.f32 %v1637_v21, %v3422_v63  ;;  %v2521_v2 = vpop.f32.mrb[28].mxu0  ;;  %v2950_v21 = vmov 0.0|0.0  }
 0x9bd   :  { %v1652_v49 = vadd.f32 %v2521_v2, %v2151_v10  ;;  %v1646_v7 = vpop.f32.mrb[29].mxu0  ;;  %v1684_v28 = vsel %vm1108_vm11, %v1670_v37, 0.0  ;;  %2688 = vmatprep.subr.bf16.mxu1 %v2950_v21 }
 0x9be   :  { %v1647_v43 = vadd.f32 %v2151_v10, %v1646_v7  ;;  %1685 = vadd.xlane.f32.xlu0 %v1684_v28  ;;  %v1681_v8 = vsel %vm1108_vm11, %v1669_v60, 0.0  ;;  %v1971_v7 = vld [vmem:[#allocation2 + $0x128] sm:$0xff] }
 0x9bf   :  { %v1672_v11 = vadd.f32 %v1652_v49, %v3441_v44  ;;  %1682 = vadd.xlane.f32.xlu1 %v1681_v8  ;;  %v1970_v49 = vld [vmem:[#allocation2 + $0x120] sm:$0xff]  ;;  %v1973_v8 = vld [vmem:[#allocation2 + $0x138] sm:$0xff] }
 0x9c0   :  { %v1671_v13 = vadd.f32 %v1647_v43, %v3428_v14  ;;  %v2524_v32 = vpop.f32.mrb[30].mxu0  ;;  %v2695_v28 = vpack.c.bf16 %v1971_v7, %v1970_v49  ;;  %v1972_v43 = vld [vmem:[#allocation2 + $0x130] sm:$0xff] }
 0x9c1   :  { %v1662_v35 = vadd.f32 %v2524_v32, %v2151_v10  ;;  %v1656_v59 = vpop.f32.mrb[31].mxu0  ;;  %v1690_v15 = vsel %vm1108_vm11, %v1672_v11, 0.0 }
 0x9c2   :  { %v1657_v63 = vadd.f32 %v2151_v10, %v1656_v59  ;;  %1691 = vadd.xlane.f32.xlu0 %v1690_v15  ;;  %v1687_v31 = vsel %vm1108_vm11, %v1671_v13, 0.0 }
 0x9c3   :  { %v1674_v61 = vadd.f32 %v1662_v35, %v3447_v27  ;;  %1688 = vadd.xlane.f32.xlu1 %v1687_v31 }
 0x9c4   :  { %v1673_v17 = vadd.f32 %v1657_v63, %v3438_v58 }
 0x9c5   :  { %v1696_v40 = vsel %vm1108_vm11, %v1674_v61, 0.0 }
 0x9c6   :  { %1697 = vadd.xlane.f32.xlu0 %v1696_v40  ;;  %v1693_v44 = vsel %vm1108_vm11, %v1673_v17, 0.0 }
 0x9c7   :  { %1694 = vadd.xlane.f32.xlu1 %v1693_v44 }
 0xa40   :  { %v1680_v14 = vpop.xlane.xlu0 %1679 }
 0xa41   :  { %v1700_v45 = vmul.f32 0.03125, %v1680_v14  ;;  %v1677_v18 = vpop.xlane.xlu1 %1676 }
 0xa42   :  { %v1699_v56 = vmul.f32 0.03125, %v1677_v18 }
 0xa43   :  { %v3475_v38 = vsub.f32 %v1668_v4, %v1700_v45  ;;  %v3515_v45 = vld [vmem:[#allocation2 + $0x185] ss:$0 sm:$0xff] }
 0xa44   :  { %v3477_v19 = vsub.f32 %v1667_v9, %v1699_v56 }
 0xa45   :  { %v1716_v27 = vmul.f32 %v3475_v38, %v3475_v38 }
 0xa46   :  { %v1715_v58 = vmul.f32 %v3477_v19, %v3477_v19 }
 0xa47   :  { %v1726_v62 = vsel %vm1108_vm11, %v1716_v27, 0.0 }
 0xa48   :  { %1727 = vadd.xlane.f32.xlu0 %v1726_v62  ;;  %v1723_v5 = vsel %vm1108_vm11, %v1715_v58, 0.0 }
 0xa49   :  { %1724 = vadd.xlane.f32.xlu1 %v1723_v5 }
 0xa4b   :  { %v1686_v23 = vpop.xlane.xlu0 %1685 }
 0xa4c   :  { %v1702_v36 = vmul.f32 0.03125, %v1686_v23  ;;  %v1683_v47 = vpop.xlane.xlu1 %1682  ;;  %v3518_v23 = vld [vmem:[#allocation2 + $0x186] ss:$0 sm:$0xff] }
 0xa4d   :  { %v1701_v48 = vmul.f32 0.03125, %v1683_v47 }
 0xa4e   :  { %v3485_v0 = vsub.f32 %v1670_v37, %v1702_v36  ;;  %v2689_v37 = vpack.c.bf16 %v1967_v52, %v1966_v29 }
 0xa4f   :  { %v3487_v24 = vsub.f32 %v1669_v60, %v1701_v48  ;;  %v1692_v50 = vpop.xlane.xlu0 %1691  ;;  %v1969_v60 = vld [vmem:[#allocation2 + $0x118] sm:$0xff] }
 0xa50   :  { %v1704_v51 = vmul.f32 0.03125, %v1692_v50  ;;  %v1689_v1 = vpop.xlane.xlu1 %1688  ;;  %v1718_v3 = vmul.f32 %v3485_v0, %v3485_v0  ;;  %2690 = vmatpush3.bf16.msra.mxu1 %v2689_v37  ;;  %v2692_v2 = vpack.c.bf16 %v1969_v60, %v1968_v57 }
 0xa51   :  { %v1703_v25 = vmul.f32 0.03125, %v1689_v1  ;;  %v1717_v26 = vmul.f32 %v3487_v24, %v3487_v24  ;;  %2691 = vmatprep.subr.bf16.mxu1 %v2950_v21 }
 0xa52   :  { %v3493_v53 = vsub.f32 %v1672_v11, %v1704_v51  ;;  %v1732_v54 = vsel %vm1108_vm11, %v1718_v3, 0.0  ;;  %v2698_v11 = vpack.c.bf16 %v1973_v8, %v1972_v43 }
 0xa53   :  { %v3496_v41 = vsub.f32 %v1671_v13, %v1703_v25  ;;  %1733 = vadd.xlane.f32.xlu0 %v1732_v54  ;;  %v1698_v42 = vpop.xlane.xlu0 %1697  ;;  %v1729_v6 = vsel %vm1108_vm11, %v1717_v26, 0.0 }
 0xa54   :  { %v1706_v30 = vmul.f32 0.03125, %v1698_v42  ;;  %1730 = vadd.xlane.f32.xlu1 %v1729_v6  ;;  %v1695_v33 = vpop.xlane.xlu1 %1694  ;;  %v1720_v34 = vmul.f32 %v3493_v53, %v3493_v53  ;;  %2693 = vmatpush3.bf16.msra.mxu1 %v2692_v2 }
 0xa55   :  { %v1705_v46 = vmul.f32 0.03125, %v1695_v33  ;;  %v1719_v10 = vmul.f32 %v3496_v41, %v3496_v41  ;;  %2694 = vmatprep.subr.bf16.mxu1 %v2950_v21 }
 0xa56   :  { %v3503_v55 = vsub.f32 %v1674_v61, %v1706_v30  ;;  %v1738_v12 = vsel %vm1108_vm11, %v1720_v34, 0.0 }
 0xa57   :  { %v3506_v20 = vsub.f32 %v1673_v17, %v1705_v46  ;;  %1739 = vadd.xlane.f32.xlu0 %v1738_v12  ;;  %v1735_v39 = vsel %vm1108_vm11, %v1719_v10, 0.0 }
 0xa58   :  { %1736 = vadd.xlane.f32.xlu1 %v1735_v39  ;;  %v1722_v4 = vmul.f32 %v3503_v55, %v3503_v55  ;;  %2696 = vmatpush3.bf16.msra.mxu1 %v2695_v28 }
 0xa59   :  { %v1721_v9 = vmul.f32 %v3506_v20, %v3506_v20  ;;  %2697 = vmatprep.subr.bf16.mxu1 %v2950_v21 }
 0xa5a   :  { %v1744_v16 = vsel %vm1108_vm11, %v1722_v4, 0.0 }
 0xa5b   :  { %1745 = vadd.xlane.f32.xlu0 %v1744_v16  ;;  %v1741_v22 = vsel %vm1108_vm11, %v1721_v9, 0.0 }
 0xa5c   :  { %1742 = vadd.xlane.f32.xlu1 %v1741_v22  ;;  %2699 = vmatpush3.bf16.msra.mxu1 %v2698_v11 }
 0xad5   :  { %v1728_v13 = vpop.xlane.xlu0 %1727 }
 0xad6   :  { %v1748_v32 = vmul.f32 0.03125, %v1728_v13  ;;  %v1725_v35 = vpop.xlane.xlu1 %1724 }
 0xad7   :  { %v1747_v59 = vmul.f32 0.03125, %v1725_v35 }
 0xad8   :  { %v1756_v15 = vadd.f32 1e-05, %v1748_v32 }
 0xad9   :  { %v1755_v63 = vadd.f32 1e-05, %v1747_v59 }
 0xada   :  { %2876 = vrsqrt.f32 %v1756_v15 }
 0xadb   :  { %2878 = vrsqrt.f32 %v1755_v63 }
 0xae0   :  { %v1734_v31 = vpop.xlane.xlu0 %1733 }
 0xae1   :  { %v1750_v61 = vmul.f32 0.03125, %v1734_v31  ;;  %v1731_v17 = vpop.xlane.xlu1 %1730 }
 0xae2   :  { %v1749_v40 = vmul.f32 0.03125, %v1731_v17 }
 0xae3   :  { %v1758_v44 = vadd.f32 1e-05, %v1750_v61 }
 0xae4   :  { %v2877_v14 = vpop.eup %2876  ;;  %v1757_v18 = vadd.f32 1e-05, %v1749_v40  ;;  %v1740_v56 = vpop.xlane.xlu0 %1739 }
 0xae5   :  { %v2879_v27 = vpop.eup %2878  ;;  %v1772_v58 = vmul.f32 %v2877_v14, %v3475_v38  ;;  %2880 = vrsqrt.f32 %v1758_v44  ;;  %v1752_v62 = vmul.f32 0.03125, %v1740_v56  ;;  %v1737_v5 = vpop.xlane.xlu1 %1736 }
 0xae6   :  { %v1771_v36 = vmul.f32 %v2879_v27, %v3477_v19  ;;  %2882 = vrsqrt.f32 %v1757_v18  ;;  %v1751_v47 = vmul.f32 0.03125, %v1737_v5 }
 0xae7   :  { %v1784_v48 = vmul.f32 %v3515_v45, %v1772_v58  ;;  %v1760_v50 = vadd.f32 1e-05, %v1752_v62 }
 0xae8   :  { %v1783_v51 = vmul.f32 %v3515_v45, %v1771_v36  ;;  %v1759_v1 = vadd.f32 1e-05, %v1751_v47  ;;  %v1746_v3 = vpop.xlane.xlu0 %1745 }
 0xae9   :  { %v1796_v25 = vadd.f32 %v3518_v23, %v1784_v48  ;;  %2884 = vrsqrt.f32 %v1760_v50  ;;  %v1754_v38 = vmul.f32 0.03125, %v1746_v3  ;;  %v1743_v26 = vpop.xlane.xlu1 %1742 }
 0xaea   :  { %v1795_v54 = vadd.f32 %v3518_v23, %v1783_v51  ;;  %2886 = vrsqrt.f32 %v1759_v1  ;;  %v1753_v42 = vmul.f32 0.03125, %v1743_v26 }
 0xaeb   :  { %v1810_v19 = vsel %vm1108_vm11, %v1796_v25, 0.0  ;;  %v1874_v6 = vsel %vm1108_vm11, %v1796_v25, -inf  ;;  %v1762_v30 = vadd.f32 1e-05, %v1754_v38 }
 0xaec   :  { %v1811_v33 = vrot.slane %v1810_v19, 4  ;;  %v1875_v34 = vrot.slane %v1874_v6, 4  ;;  %v1803_v46 = vsel %vm1108_vm11, %v1795_v54, 0.0  ;;  %v1867_v10 = vsel %vm1108_vm11, %v1795_v54, -inf }
 0xaed   :  { %v1804_v12 = vrot.slane %v1803_v46, 4  ;;  %v1868_v39 = vrot.slane %v1867_v10, 4  ;;  %2888 = vrsqrt.f32 %v1762_v30  ;;  %v1761_v4 = vadd.f32 1e-05, %v1753_v42 }
 0xaee   :  { %v1812_v9 = vadd.f32 %v1811_v33, %v1810_v19  ;;  %v1876_v16 = vmax.f32 %v1874_v6, %v1875_v34 }
 0xaef   :  { %v2881_v22 = vpop.eup %2880  ;;  %v1805_v29 = vadd.f32 %v1804_v12, %v1803_v46  ;;  %v1869_v52 = vmax.f32 %v1867_v10, %v1868_v39  ;;  %2890 = vrsqrt.f32 %v1761_v4 }
 0xaf0   :  { %v2883_v57 = vpop.eup %2882  ;;  %v1813_v21 = vrot.slane %v1812_v9, 2  ;;  %v1877_v37 = vrot.slane %v1876_v16, 2  ;;  %v1774_v60 = vmul.f32 %v2881_v22, %v3485_v0 }
 0xaf1   :  { %v1806_v2 = vrot.slane %v1805_v29, 2  ;;  %v1870_v49 = vrot.slane %v1869_v52, 2  ;;  %v1773_v7 = vmul.f32 %v2883_v57, %v3487_v24 }
 0xaf2   :  { %v3531_v28 = vadd.f32 %v1813_v21, %v1812_v9  ;;  %v1878_v43 = vmax.f32 %v1876_v16, %v1877_v37  ;;  %v1786_v8 = vmul.f32 %v3515_v45, %v1774_v60 }
 0xaf3   :  { %v2885_v11 = vpop.eup %2884  ;;  %v3534_v13 = vadd.f32 %v1806_v2, %v1805_v29  ;;  %v1871_v32 = vmax.f32 %v1869_v52, %v1870_v49  ;;  %v1785_v35 = vmul.f32 %v3515_v45, %v1773_v7 }
 0xaf4   :  { %v2887_v59 = vpop.eup %2886  ;;  %v1815_v15 = vrot.slane %v3531_v28, 1  ;;  %v1798_v0 = vadd.f32 %v3518_v23, %v1786_v8  ;;  %v1776_v63 = vmul.f32 %v2885_v11, %v3493_v53  ;;  %v1879_v31 = vrot.slane %v1878_v43, 1 }
 0xaf5   :  { %v1808_v24 = vrot.slane %v3534_v13, 1  ;;  %v1797_v61 = vadd.f32 %v3518_v23, %v1785_v35  ;;  %v1775_v17 = vmul.f32 %v2887_v59, %v3496_v41  ;;  %v1872_v40 = vrot.slane %v1871_v32, 1 }
 0xaf6   :  { %v1824_v44 = vsel %vm1108_vm11, %v1798_v0, 0.0  ;;  %v1888_v14 = vsel %vm1108_vm11, %v1798_v0, -inf  ;;  %v1788_v18 = vmul.f32 %v3515_v45, %v1776_v63  ;;  %v1880_v56 = vmax.f32 %v1878_v43, %v1879_v31 }
 0xaf7   :  { %v2889_v27 = vpop.eup %2888  ;;  %v1825_v58 = vrot.slane %v1824_v44, 4  ;;  %v1889_v62 = vrot.slane %v1888_v14, 4  ;;  %v1817_v53 = vsel %vm1108_vm11, %v1797_v61, 0.0  ;;  %v1881_v5 = vsel %vm1108_vm11, %v1797_v61, -inf }
 0xaf8   :  { %v1818_v36 = vrot.slane %v1817_v53, 4  ;;  %v1882_v47 = vrot.slane %v1881_v5, 4  ;;  %v3549_v41 = vadd.f32 %v3518_v23, %v1788_v18  ;;  %v1787_v48 = vmul.f32 %v3515_v45, %v1775_v17 }
 0xaf9   :  { %v2891_v50 = vpop.eup %2890  ;;  %v1826_v51 = vadd.f32 %v1825_v58, %v1824_v44  ;;  %v1890_v1 = vmax.f32 %v1888_v14, %v1889_v62  ;;  %v1778_v3 = vmul.f32 %v2889_v27, %v3503_v55  ;;  %v1873_v25 = vmax.f32 %v1871_v32, %v1872_v40 }
 0xafa   :  { %v1819_v38 = vadd.f32 %v1818_v36, %v1817_v53  ;;  %v1883_v26 = vmax.f32 %v1881_v5, %v1882_v47  ;;  %v1799_v54 = vadd.f32 %v3518_v23, %v1787_v48  ;;  %v1777_v42 = vmul.f32 %v2891_v50, %v3506_v20 }
 0xafb   :  { %v1827_v19 = vrot.slane %v1826_v51, 2  ;;  %v1790_v6 = vmul.f32 %v3515_v45, %v1778_v3  ;;  %v1891_v30 = vrot.slane %v1890_v1, 2  ;;  %v1902_v33 = vsel %vm1108_vm11, %v3549_v41, -inf }
 0xafc   :  { %v1820_v34 = vrot.slane %v1819_v38, 2  ;;  %v1884_v46 = vrot.slane %v1883_v26, 2  ;;  %v1831_v55 = vsel %vm1108_vm11, %v1799_v54, 0.0  ;;  %v1895_v10 = vsel %vm1108_vm11, %v1799_v54, -inf }
 0xafd   :  { %v1832_v12 = vrot.slane %v1831_v55, 4  ;;  %v1896_v39 = vrot.slane %v1895_v10, 4  ;;  %v1789_v4 = vmul.f32 %v3515_v45, %v1777_v42  ;;  %v3562_v20 = vadd.f32 %v3518_v23, %v1790_v6 }
 0xafe   :  { %v1821_v9 = vadd.f32 %v1820_v34, %v1819_v38  ;;  %v1885_v16 = vmax.f32 %v1883_v26, %v1884_v46  ;;  %v1892_v22 = vmax.f32 %v1890_v1, %v1891_v30  ;;  %v1903_v29 = vrot.slane %v1902_v33, 4 }
 0xaff   :  { %v1833_v52 = vadd.f32 %v1832_v12, %v1831_v55  ;;  %v1801_v57 = vadd.f32 %v3518_v23, %v1789_v4  ;;  %v1897_v21 = vmax.f32 %v1895_v10, %v1896_v39  ;;  %v1916_v37 = vsel %vm1108_vm11, %v3562_v20, -inf }
 0xb00   :  { %v1886_v60 = vrot.slane %v1885_v16, 1  ;;  %v1893_v2 = vrot.slane %v1892_v22, 1  ;;  %v1904_v49 = vmax.f32 %v1902_v33, %v1903_v29  ;;  %v1917_v45 = vrot.slane %v1916_v37, 4 }
 0xb01   :  { %v1898_v7 = vrot.slane %v1897_v21, 2  ;;  %v1909_v43 = vsel %vm1108_vm11, %v1801_v57, -inf  ;;  %v1954_v8 = vsel %vm1931_vm12, %v1880_v56, %v1873_v25  ;;  %v1809_v11 = vadd.f32 %v1808_v24, %v3534_v13 }
 0xb02   :  { %v1887_v32 = vmax.f32 %v1885_v16, %v1886_v60  ;;  %v1894_v35 = vmax.f32 %v1892_v22, %v1893_v2  ;;  %v1905_v59 = vrot.slane %v1904_v49, 2  ;;  %v1910_v23 = vrot.slane %v1909_v43, 4 }
 0xb03   :  { %v1899_v0 = vmax.f32 %v1897_v21, %v1898_v7  ;;  %v1918_v63 = vmax.f32 %v1916_v37, %v1917_v45  ;;  %v1816_v31 = vadd.f32 %v1815_v15, %v3531_v28  ;;  %v1822_v61 = vrot.slane %v1821_v9, 1 }
 0xb04   :  { %v1906_v17 = vmax.f32 %v1904_v49, %v1905_v59  ;;  %v1911_v40 = vmax.f32 %v1909_v43, %v1910_v23  ;;  %v1955_v44 = vsel %vm1933_vm13, %v1887_v32, %v1954_v8  ;;  %v1828_v14 = vadd.f32 %v1827_v19, %v1826_v51 }
 0xb05   :  { %v1900_v18 = vrot.slane %v1899_v0, 1  ;;  %v1919_v13 = vrot.slane %v1918_v63, 2  ;;  %v1956_v24 = vsel %vm1935_vm14, %v1894_v35, %v1955_v44  ;;  %v1823_v56 = vadd.f32 %v1822_v61, %v1821_v9 }
 0xb06   :  { %v1907_v27 = vrot.slane %v1906_v17, 1  ;;  %v1912_v58 = vrot.slane %v1911_v40, 2  ;;  %v1829_v62 = vrot.slane %v1828_v14, 1  ;;  %v1834_v53 = vrot.slane %v1833_v52, 2 }
 0xb07   :  { %v1901_v5 = vmax.f32 %v1899_v0, %v1900_v18  ;;  %v1920_v36 = vmax.f32 %v1918_v63, %v1919_v13  ;;  %v1838_v28 = vsel %vm1108_vm11, %v3549_v41, 0.0  ;;  %v1845_v15 = vsel %vm1108_vm11, %v1801_v57, 0.0 }
 0xb08   :  { %v1908_v47 = vmax.f32 %v1906_v17, %v1907_v27  ;;  %v1913_v48 = vmax.f32 %v1911_v40, %v1912_v58  ;;  %v1830_v50 = vadd.f32 %v1829_v62, %v1828_v14  ;;  %v1835_v51 = vadd.f32 %v1834_v53, %v1833_v52  ;;  %v2162_v14 = vld [vmem:[#allocation2 + $0x187] ss:$0 sm:$0xff] }
 0xb09   :  { %v1921_v1 = vrot.slane %v1920_v36, 1  ;;  %v1957_v3 = vsel %vm1937_vm15, %v1901_v5, %v1956_v24  ;;  %v1839_v25 = vrot.slane %v1838_v28, 4  ;;  %v1846_v38 = vrot.slane %v1845_v15, 4 }
 0xb0a   :  { %v1914_v26 = vrot.slane %v1913_v48, 1  ;;  %v1958_v54 = vsel %vm1939_vm0, %v1908_v47, %v1957_v3  ;;  %v1836_v42 = vrot.slane %v1835_v51, 1  ;;  %v1859_v19 = vmul.f32 0.125, %v1809_v11 }
 0xb0b   :  { %v1922_v6 = vmax.f32 %v1920_v36, %v1921_v1  ;;  %v1840_v30 = vadd.f32 %v1839_v25, %v1838_v28  ;;  %v1847_v33 = vadd.f32 %v1846_v38, %v1845_v15  ;;  %v1860_v41 = vmul.f32 0.125, %v1816_v31 }
 0xb0c   :  { %v1915_v34 = vmax.f32 %v1913_v48, %v1914_v26  ;;  %v1837_v46 = vadd.f32 %v1836_v42, %v1835_v51  ;;  %v1861_v55 = vmul.f32 0.125, %v1823_v56  ;;  %v1862_v10 = vmul.f32 0.125, %v1830_v50 }
 0xb0d   :  { %v1841_v12 = vrot.slane %v1840_v30, 2  ;;  %v1848_v39 = vrot.slane %v1847_v33, 2  ;;  %v1932_v4 = vsel %vm1931_vm12, %v1860_v41, %v1859_v19  ;;  %v1852_v9 = vsel %vm1108_vm11, %v3562_v20, 0.0 }
 0xb0e   :  { %v1959_v16 = vsel %vm1941_vm1, %v1915_v34, %v1958_v54  ;;  %v1863_v22 = vmul.f32 0.125, %v1837_v46  ;;  %v1934_v29 = vsel %vm1933_vm13, %v1861_v55, %v1932_v4  ;;  %v1853_v52 = vrot.slane %v1852_v9, 4 }
 0xb0f   :  { %v1960_v57 = vsel %vm1943_vm2, %v1922_v6, %v1959_v16  ;;  %v1842_v21 = vadd.f32 %v1841_v12, %v1840_v30  ;;  %v1849_v37 = vadd.f32 %v1848_v39, %v1847_v33  ;;  %v1936_v60 = vsel %vm1935_vm14, %v1862_v10, %v1934_v29 }
 0xb10   :  { %1961 = vrot.lane.b32.xlu1 %v1960_v57, %s2948_s12  ;;  %v1938_v2 = vsel %vm1937_vm15, %v1863_v22, %v1936_v60  ;;  %v1854_v49 = vadd.f32 %v1853_v52, %v1852_v9  ;;  %v2952_v20 = vmov 0.0  }
 0xb11   :  { %v1843_v45 = vrot.slane %v1842_v21, 1  ;;  %v1850_v7 = vrot.slane %v1849_v37, 1  ;;  %2541 = vmatprep.mubr.msk.f32.mxu1 %vm2951_vm3, %v2952_v20 }
 0xb12   :  { %v1855_v43 = vrot.slane %v1854_v49, 2 }
 0xb13   :  { %v1844_v8 = vadd.f32 %v1843_v45, %v1842_v21  ;;  %v1851_v11 = vadd.f32 %v1850_v7, %v1849_v37 }
 0xb14   :  { %v1856_v32 = vadd.f32 %v1855_v43, %v1854_v49 }
 0xb15   :  { %v1864_v35 = vmul.f32 0.125, %v1844_v8  ;;  %v1865_v59 = vmul.f32 0.125, %v1851_v11 }
 0xb16   :  { %v1857_v23 = vrot.slane %v1856_v32, 1 }
 0xb17   :  { %v1940_v0 = vsel %vm1939_vm0, %v1864_v35, %v1938_v2 }
 0xb18   :  { %v1942_v63 = vsel %vm1941_vm1, %v1865_v59, %v1940_v0  ;;  %v1858_v31 = vadd.f32 %v1857_v23, %v1856_v32 }
 0xb1a   :  { %v1866_v61 = vmul.f32 0.125, %v1858_v31 }
 0xb1c   :  { %v1944_v17 = vsel %vm1943_vm2, %v1866_v61, %v1942_v63 }
 0xb82   :  { %v1962_v40 = vpop.permute.xlu1 %1961 }
 0xb83   :  { %v1964_v44 = vsel %vm1108_vm11, %v1944_v17, %v1962_v40 }
 0xb84   :  { %2542 = vmatmul.mubr.msk.f32.vlgmr.msra.gmra.mrb[32].mxu1 %vm576_vm10, %v1964_v44 }
 0xc57   :  { %v2047_v18 = vpop.f32.mrb[32].mxu1 }
 0xc58   :  { %v2048_v13 = vadd.f32 %v2162_v14, %v2047_v18  ;;  %v2543_v24 = vpop.f32.mrb[33].mxu1 }
 0xc5a   :  { %2051 = vst.msk [vmem:[#allocation5] sm:$0xff] %vm269_vm8, %v2048_v13 }
 0xc5b   :  { %2925 = shalt.err (!%p2922_p12)
}
 0xc5c   :  { %s2926_s19 = scalar_lea.hbm %s3609_s2, 128 }
 0xc5d   :  { %p2927_p13 = scmp.ne.s32.totalorder %s3609_s2, %s2926_s19  ;;  %p2930_p0 = scmp.lt.u32.totalorder %s2926_s19, %s3609_s2 }
 0xc5f   :  { %p2932_p1 = pnand %p2930_p0, %p2927_p13 }
 0xc61   :  { %2935 = shalt.err (!%p2932_p1)
}
 0xc62   :  { %2061 = dma.vmem_to_hbm [thread:$0]  %s2059_s15, 128, %s3609_s2, [#allocation4]  }
 0xc63   :  { %2938 = dma.done.wait [#allocation4], 128  }
 0xc64   :  { %2939 = vsyncadd [#allocation4], 4294967168 }
 0xc65   :  { %2065 = vsyncpa [#allocation3], 1 }
 0xc66   :  { %2066 = vsyncpa [#allocation4], 1 }

</bundles_post_ra>
